<compile_context>
chip_gen: v5e
topology: v5e:2x2
jax: 0.10.0
libtpu: 0.0.40
codegen_flags: <defaults>
</compile_context>

<pallas_src>
import functools
import math

import jax
import jax.numpy as jnp
from jax.experimental import pallas as pl
from jax.experimental.pallas import tpu as pltpu

LN_EPS = 1e-12        # BERT LayerNorm eps
NUM_HEADS = 4


def _layer_norm(x, gamma, beta):
    mu = jnp.mean(x, axis=-1, keepdims=True)
    xc = x - mu
    var = jnp.mean(xc * xc, axis=-1, keepdims=True)
    return xc * jax.lax.rsqrt(var + LN_EPS) * gamma + beta


def _gelu_tanh(x):
    # tanh-approximate gelu (EUP tanh); used identically in kernel and reference.
    c = math.sqrt(2.0 / math.pi)
    return 0.5 * x * (1.0 + jnp.tanh(c * (x + 0.044715 * x * x * x)))


def _mm(a, w):
    # bf16 MXU inputs, f32 accumulation.
    return jnp.dot(a.astype(jnp.bfloat16), w, preferred_element_type=jnp.float32)


def gat_layer_kernel(q_ref, k_ref, v_ref,
                     wq_ref, bq_ref, wk_ref, bk_ref, wv_ref, bv_ref,
                     wo_ref, bo_ref, g1_ref, be1_ref,
                     w1_ref, b1_ref, w2_ref, b2_ref, g2_ref, be2_ref,
                     o_ref, *, num_heads):
    xq = q_ref[0]                       # (Lq, H) f32
    xk = k_ref[0]                       # (Lk, H) f32
    xv = v_ref[0]                       # (Lk, H) f32

    H = xq.shape[-1]
    dh = H // num_heads
    scale = 1.0 / math.sqrt(dh)

    # --- Q/K/V projections (bf16 MXU, f32 accumulate) ----------------------
    q_p = _mm(xq, wq_ref[...]) + bq_ref[...]        # (Lq, H)
    k_p = _mm(xk, wk_ref[...]) + bk_ref[...]        # (Lk, H)
    v_p = _mm(xv, wv_ref[...]) + bv_ref[...]        # (Lk, H)

    # --- multi-head attention via full-width column masks ------------------
    # TODO(synk): attention_mask / position_weight (None in this test) would be an
    # additive bias / multiplicative reweight on `s` below.
    col = jax.lax.broadcasted_iota(jnp.int32, (1, H), 1)
    ctx = jnp.zeros_like(q_p)
    for h in range(num_heads):                       # static, unrolled
        lo = h * dh
        mask = ((col >= lo) & (col < lo + dh)).astype(jnp.float32)   # (1, H)
        qh = q_p * (mask * scale)                    # zero all non-head columns
        s = jnp.einsum("qd,kd->qk", qh, k_p,
                       preferred_element_type=jnp.float32)           # (Lq, Lk)
        s = s - jnp.max(s, axis=-1, keepdims=True)
        p = jnp.exp(s)
        p = p * pl.reciprocal(jnp.sum(p, axis=-1, keepdims=True), approx=False)
        ctx = ctx + jnp.dot(p, v_p * mask, preferred_element_type=jnp.float32)

    # --- self-output: dense + residual(querys) + LayerNorm ------------------
    attn = _mm(ctx, wo_ref[...]) + bo_ref[...] + xq
    attn = _layer_norm(attn, g1_ref[...], be1_ref[...])

    # --- feed-forward: dense + gelu + dense + residual + LayerNorm ----------
    inter = _gelu_tanh(_mm(attn, w1_ref[...]) + b1_ref[...])
    out = _mm(inter, w2_ref[...]) + b2_ref[...] + attn
    out = _layer_norm(out, g2_ref[...], be2_ref[...])

    o_ref[0] = out.astype(o_ref.dtype)


def gat_layer(querys, keys, values, lp, *, num_heads=NUM_HEADS):
    """One GATLayer forward. querys: (B, Lq, H); keys/values: (B, Lk, H)."""
    B, Lq, H = querys.shape
    _, Lk, _ = keys.shape

    # Weights feed the MXU: ship them pre-cast to bf16 (halves weight DMA traffic).
    bf = lambda a: a.astype(jnp.bfloat16)
    args = (
        querys, keys, values,
        bf(lp["wq"]), lp["bq"], bf(lp["wk"]), lp["bk"], bf(lp["wv"]), lp["bv"],
        bf(lp["wo"]), lp["bo"], lp["ln1_g"], lp["ln1_b"],
        bf(lp["w1"]), lp["b1"], bf(lp["w2"]), lp["b2"], lp["ln2_g"], lp["ln2_b"],
    )

    seq_spec = lambda L: pl.BlockSpec((1, L, H), lambda b: (b, 0, 0))
    pin = lambda a: pl.BlockSpec(a.shape, lambda b: (0,) * a.ndim)  # resident weights
    in_specs = [seq_spec(Lq), seq_spec(Lk), seq_spec(Lk)] + [pin(a) for a in args[3:]]

    return pl.pallas_call(
        functools.partial(gat_layer_kernel, num_heads=num_heads),
        out_shape=jax.ShapeDtypeStruct((B, Lq, H), jnp.float32),
        grid=(B,),
        in_specs=in_specs,
        out_specs=pl.BlockSpec((1, Lq, H), lambda b: (b, 0, 0)),
        compiler_params=pltpu.CompilerParams(
            dimension_semantics=("parallel",),          # megacore sharding on v7x
            vmem_limit_bytes=32 * 1024 * 1024,          # safe on v5e/v6e/v7x
        ),
    )(*args)


def gat_forward(querys, keys, values, layer_params, *, num_heads=NUM_HEADS):
    """Mirrors GAT.forward: every layer consumes the ORIGINAL querys/keys/values
    and only the last layer's output is returned."""
    hidden_states = querys
    for lp in layer_params:
        hidden_states = gat_layer(querys, keys, values, lp, num_heads=num_heads)
    return hidden_states


def init_layer_params(key, hidden, inter):
    ks = jax.random.split(key, 12)
    s = 0.05
    n = lambda k, shp: s * jax.random.normal(k, shp, jnp.float32)
    return {
        "wq": n(ks[0], (hidden, hidden)), "bq": n(ks[1], (1, hidden)),
        "wk": n(ks[2], (hidden, hidden)), "bk": n(ks[3], (1, hidden)),
        "wv": n(ks[4], (hidden, hidden)), "bv": n(ks[5], (1, hidden)),
        "wo": n(ks[6], (hidden, hidden)), "bo": n(ks[7], (1, hidden)),
        "ln1_g": jnp.ones((1, hidden), jnp.float32),
        "ln1_b": jnp.zeros((1, hidden), jnp.float32),
        "w1": n(ks[8], (hidden, inter)), "b1": n(ks[9], (1, inter)),
        "w2": n(ks[10], (inter, hidden)), "b2": n(ks[11], (1, hidden)),
        "ln2_g": jnp.ones((1, hidden), jnp.float32),
        "ln2_b": jnp.zeros((1, hidden), jnp.float32),
    }


def reference(querys, keys, values, layer_params, *, num_heads=NUM_HEADS):
    """Pure-JAX reference (eval mode). Matmuls use the same bf16-input / f32-accumulate
    policy as the kernel so the comparison isolates kernel correctness; a pure-f32
    PyTorch run differs from both only by standard bf16 rounding."""
    mm = lambda a, w: jnp.dot(a.astype(jnp.bfloat16), w.astype(jnp.bfloat16),
                              preferred_element_type=jnp.float32)

    def layer(q, k, v, p):
        B, Lq, H = q.shape
        dh = H // num_heads
        qp = mm(q, p["wq"]) + p["bq"]
        kp = mm(k, p["wk"]) + p["bk"]
        vp = mm(v, p["wv"]) + p["bv"]
        split = lambda x: x.reshape(x.shape[0], x.shape[1], num_heads, dh).transpose(0, 2, 1, 3)
        qh, kh, vh = split(qp), split(kp), split(vp)
        s = jnp.einsum("bhqd,bhkd->bhqk", qh, kh) / math.sqrt(dh)
        pr = jax.nn.softmax(s, axis=-1)
        ctx = jnp.einsum("bhqk,bhkd->bhqd", pr, vh).transpose(0, 2, 1, 3).reshape(B, Lq, H)
        attn = _layer_norm(mm(ctx, p["wo"]) + p["bo"] + q, p["ln1_g"], p["ln1_b"])
        inter = _gelu_tanh(mm(attn, p["w1"]) + p["b1"])
        return _layer_norm(mm(inter, p["w2"]) + p["b2"] + attn, p["ln2_g"], p["ln2_b"])

    hidden = querys
    for lp in layer_params:
        hidden = layer(querys, keys, values, lp)
    return hidden


if __name__ == "__main__":
    B, LQ, LK = 2, 8, 8
    HIDDEN, INTER, NUM_LAYERS = 128, 256, 2     # hidden multiple of 128 -> lane-dense

    key = jax.random.PRNGKey(0)
    kq, kk, kv, kp = jax.random.split(key, 4)
    querys = jax.random.normal(kq, (B, LQ, HIDDEN), jnp.float32)
    keys = jax.random.normal(kk, (B, LK, HIDDEN), jnp.float32)
    values = jax.random.normal(kv, (B, LK, HIDDEN), jnp.float32)

    layer0 = init_layer_params(kp, HIDDEN, INTER)
    layer_params = [layer0 for _ in range(NUM_LAYERS)]   # copy.deepcopy -> identical weights

    out = gat_forward(querys, keys, values, layer_params)
    out = jax.block_until_ready(out)

    ref = reference(querys, keys, values, layer_params)
    assert out.shape == (B, LQ, HIDDEN)
    max_err = float(jnp.max(jnp.abs(out - ref)))
    assert jnp.allclose(out, ref, rtol=5e-3, atol=5e-3), f"mismatch vs reference (max abs err {max_err})"

    print("KERNEL_OK")
</pallas_src>

<mosaic_0001>
module attributes {stable_mosaic.version = 11 : i64} {
  func.func @gat_layer_kernel(%arg0: i32, %arg1: memref<1x8x128xf32, #tpu.memory_space<vmem>>, %arg2: memref<1x8x128xf32, #tpu.memory_space<vmem>>, %arg3: memref<1x8x128xf32, #tpu.memory_space<vmem>>, %arg4: memref<128x128xbf16, #tpu.memory_space<vmem>>, %arg5: memref<1x128xf32, #tpu.memory_space<vmem>>, %arg6: memref<128x128xbf16, #tpu.memory_space<vmem>>, %arg7: memref<1x128xf32, #tpu.memory_space<vmem>>, %arg8: memref<128x128xbf16, #tpu.memory_space<vmem>>, %arg9: memref<1x128xf32, #tpu.memory_space<vmem>>, %arg10: memref<128x128xbf16, #tpu.memory_space<vmem>>, %arg11: memref<1x128xf32, #tpu.memory_space<vmem>>, %arg12: memref<1x128xf32, #tpu.memory_space<vmem>>, %arg13: memref<1x128xf32, #tpu.memory_space<vmem>>, %arg14: memref<128x256xbf16, #tpu.memory_space<vmem>>, %arg15: memref<1x256xf32, #tpu.memory_space<vmem>>, %arg16: memref<256x128xbf16, #tpu.memory_space<vmem>>, %arg17: memref<1x128xf32, #tpu.memory_space<vmem>>, %arg18: memref<1x128xf32, #tpu.memory_space<vmem>>, %arg19: memref<1x128xf32, #tpu.memory_space<vmem>>, %arg20: memref<1x8x128xf32, #tpu.memory_space<vmem>>) attributes {dimension_semantics = [#tpu.dimension_semantics<parallel>], iteration_bounds = array<i64: 2>, scalar_prefetch = 0 : i64, scratch_operands = 0 : i64, tpu.core_type = #tpu.core_type<tc>, window_params = [{transform_indices = @transform_0, window_bounds = array<i64: 1, 8, 128>}, {transform_indices = @transform_1, window_bounds = array<i64: 1, 8, 128>}, {transform_indices = @transform_2, window_bounds = array<i64: 1, 8, 128>}, {pipeline_mode = #tpu.pipeline_mode<synchronous>, transform_indices = @transform_3, window_bounds = array<i64: 128, 128>}, {pipeline_mode = #tpu.pipeline_mode<synchronous>, transform_indices = @transform_4, window_bounds = array<i64: 1, 128>}, {pipeline_mode = #tpu.pipeline_mode<synchronous>, transform_indices = @transform_5, window_bounds = array<i64: 128, 128>}, {pipeline_mode = #tpu.pipeline_mode<synchronous>, transform_indices = @transform_6, window_bounds = array<i64: 1, 128>}, {pipeline_mode = #tpu.pipeline_mode<synchronous>, transform_indices = @transform_7, window_bounds = array<i64: 128, 128>}, {pipeline_mode = #tpu.pipeline_mode<synchronous>, transform_indices = @transform_8, window_bounds = array<i64: 1, 128>}, {pipeline_mode = #tpu.pipeline_mode<synchronous>, transform_indices = @transform_9, window_bounds = array<i64: 128, 128>}, {pipeline_mode = #tpu.pipeline_mode<synchronous>, transform_indices = @transform_10, window_bounds = array<i64: 1, 128>}, {pipeline_mode = #tpu.pipeline_mode<synchronous>, transform_indices = @transform_11, window_bounds = array<i64: 1, 128>}, {pipeline_mode = #tpu.pipeline_mode<synchronous>, transform_indices = @transform_12, window_bounds = array<i64: 1, 128>}, {pipeline_mode = #tpu.pipeline_mode<synchronous>, transform_indices = @transform_13, window_bounds = array<i64: 128, 256>}, {pipeline_mode = #tpu.pipeline_mode<synchronous>, transform_indices = @transform_14, window_bounds = array<i64: 1, 256>}, {pipeline_mode = #tpu.pipeline_mode<synchronous>, transform_indices = @transform_15, window_bounds = array<i64: 256, 128>}, {pipeline_mode = #tpu.pipeline_mode<synchronous>, transform_indices = @transform_16, window_bounds = array<i64: 1, 128>}, {pipeline_mode = #tpu.pipeline_mode<synchronous>, transform_indices = @transform_17, window_bounds = array<i64: 1, 128>}, {pipeline_mode = #tpu.pipeline_mode<synchronous>, transform_indices = @transform_18, window_bounds = array<i64: 1, 128>}, {transform_indices = @transform_19, window_bounds = array<i64: 1, 8, 128>}]} {
    %c0 = arith.constant 0 : index
    %c0_0 = arith.constant 0 : index
    %c0_1 = arith.constant 0 : index
    %0 = vector.load %arg1[%c0, %c0_0, %c0_1] : memref<1x8x128xf32, #tpu.memory_space<vmem>>, vector<1x8x128xf32>
    %1 = vector.shape_cast %0 : vector<1x8x128xf32> to vector<8x128xf32>
    %c0_2 = arith.constant 0 : index
    %c0_3 = arith.constant 0 : index
    %c0_4 = arith.constant 0 : index
    %2 = vector.load %arg2[%c0_2, %c0_3, %c0_4] : memref<1x8x128xf32, #tpu.memory_space<vmem>>, vector<1x8x128xf32>
    %3 = vector.shape_cast %2 : vector<1x8x128xf32> to vector<8x128xf32>
    %c0_5 = arith.constant 0 : index
    %c0_6 = arith.constant 0 : index
    %c0_7 = arith.constant 0 : index
    %4 = vector.load %arg3[%c0_5, %c0_6, %c0_7] : memref<1x8x128xf32, #tpu.memory_space<vmem>>, vector<1x8x128xf32>
    %5 = vector.shape_cast %4 : vector<1x8x128xf32> to vector<8x128xf32>
    %c0_8 = arith.constant 0 : index
    %c0_9 = arith.constant 0 : index
    %6 = vector.load %arg4[%c0_8, %c0_9] : memref<128x128xbf16, #tpu.memory_space<vmem>>, vector<128x128xbf16>
    %7 = arith.truncf %1 : vector<8x128xf32> to vector<8x128xbf16>
    %cst = arith.constant dense<0.000000e+00> : vector<8x128xf32>
    %8 = tpu.matmul %7, %6, %cst {dimension_numbers = #tpu.dot_dimension_numbers<[1], [0], [0], [1], [0, 0, 1, 1], [], []>} : vector<8x128xbf16>, vector<128x128xbf16>, vector<8x128xf32> -> vector<8x128xf32>
    %c0_10 = arith.constant 0 : index
    %c0_11 = arith.constant 0 : index
    %9 = vector.load %arg5[%c0_10, %c0_11] : memref<1x128xf32, #tpu.memory_space<vmem>>, vector<1x128xf32>
    %10 = vector.broadcast %9 : vector<1x128xf32> to vector<8x128xf32>
    %11 = arith.addf %8, %10 : vector<8x128xf32>
    %c0_12 = arith.constant 0 : index
    %c0_13 = arith.constant 0 : index
    %12 = vector.load %arg6[%c0_12, %c0_13] : memref<128x128xbf16, #tpu.memory_space<vmem>>, vector<128x128xbf16>
    %13 = arith.truncf %3 : vector<8x128xf32> to vector<8x128xbf16>
    %cst_14 = arith.constant dense<0.000000e+00> : vector<8x128xf32>
    %14 = tpu.matmul %13, %12, %cst_14 {dimension_numbers = #tpu.dot_dimension_numbers<[1], [0], [0], [1], [0, 0, 1, 1], [], []>} : vector<8x128xbf16>, vector<128x128xbf16>, vector<8x128xf32> -> vector<8x128xf32>
    %c0_15 = arith.constant 0 : index
    %c0_16 = arith.constant 0 : index
    %15 = vector.load %arg7[%c0_15, %c0_16] : memref<1x128xf32, #tpu.memory_space<vmem>>, vector<1x128xf32>
    %16 = vector.broadcast %15 : vector<1x128xf32> to vector<8x128xf32>
    %17 = arith.addf %14, %16 : vector<8x128xf32>
    %c0_17 = arith.constant 0 : index
    %c0_18 = arith.constant 0 : index
    %18 = vector.load %arg8[%c0_17, %c0_18] : memref<128x128xbf16, #tpu.memory_space<vmem>>, vector<128x128xbf16>
    %19 = arith.truncf %5 : vector<8x128xf32> to vector<8x128xbf16>
    %cst_19 = arith.constant dense<0.000000e+00> : vector<8x128xf32>
    %20 = tpu.matmul %19, %18, %cst_19 {dimension_numbers = #tpu.dot_dimension_numbers<[1], [0], [0], [1], [0, 0, 1, 1], [], []>} : vector<8x128xbf16>, vector<128x128xbf16>, vector<8x128xf32> -> vector<8x128xf32>
    %c0_20 = arith.constant 0 : index
    %c0_21 = arith.constant 0 : index
    %21 = vector.load %arg9[%c0_20, %c0_21] : memref<1x128xf32, #tpu.memory_space<vmem>>, vector<1x128xf32>
    %22 = vector.broadcast %21 : vector<1x128xf32> to vector<8x128xf32>
    %23 = arith.addf %20, %22 : vector<8x128xf32>
    %24 = tpu.iota {dimensions = array<i32: 1>} : vector<1x128xi32>
    %cst_22 = arith.constant 0.000000e+00 : f32
    %25 = vector.broadcast %cst_22 : f32 to vector<8x128xf32>
    %c0_i32 = arith.constant 0 : i32
    %26 = vector.broadcast %c0_i32 : i32 to vector<1x128xi32>
    %27 = arith.cmpi sge, %24, %26 : vector<1x128xi32>
    %c32_i32 = arith.constant 32 : i32
    %28 = vector.broadcast %c32_i32 : i32 to vector<1x128xi32>
    %29 = arith.cmpi slt, %24, %28 : vector<1x128xi32>
    %30 = arith.andi %27, %29 : vector<1x128xi1>
    %31 = arith.extui %30 : vector<1x128xi1> to vector<1x128xi32>
    %32 = arith.sitofp %31 : vector<1x128xi32> to vector<1x128xf32>
    %cst_23 = arith.constant 0.176776692 : f32
    %33 = vector.broadcast %cst_23 : f32 to vector<1x128xf32>
    %34 = arith.mulf %32, %33 : vector<1x128xf32>
    %35 = vector.broadcast %34 : vector<1x128xf32> to vector<8x128xf32>
    %36 = arith.mulf %11, %35 : vector<8x128xf32>
    "tpu.trace_start"() <{level = 10 : i32, message = "qd,kd->qk"}> : () -> ()
    %cst_24 = arith.constant dense<0.000000e+00> : vector<8x8xf32>
    %37 = tpu.matmul %36, %17, %cst_24 {dimension_numbers = #tpu.dot_dimension_numbers<[1], [1], [0], [0], [0, 0, 1, 0], [], []>} : vector<8x128xf32>, vector<8x128xf32>, vector<8x8xf32> -> vector<8x8xf32>
    "tpu.trace_stop"() : () -> ()
    %cst_25 = arith.constant dense<0xFF800000> : vector<8xf32>
    %38 = vector.multi_reduction <maximumf>, %37, %cst_25 [1] : vector<8x8xf32> to vector<8xf32>
    %39 = vector.shape_cast %38 : vector<8xf32> to vector<8x1xf32>
    %40 = vector.broadcast %39 : vector<8x1xf32> to vector<8x8xf32>
    %41 = arith.subf %37, %40 : vector<8x8xf32>
    %42 = math.exp %41 : vector<8x8xf32>
    %cst_26 = arith.constant dense<0.000000e+00> : vector<8xf32>
    %43 = vector.multi_reduction <add>, %42, %cst_26 [1] : vector<8x8xf32> to vector<8xf32>
    %44 = vector.shape_cast %43 : vector<8xf32> to vector<8x1xf32>
    %45 = tpu.reciprocal %44 : vector<8x1xf32> -> vector<8x1xf32>
    %46 = vector.broadcast %45 : vector<8x1xf32> to vector<8x8xf32>
    %47 = arith.mulf %42, %46 : vector<8x8xf32>
    %48 = vector.broadcast %32 : vector<1x128xf32> to vector<8x128xf32>
    %49 = arith.mulf %23, %48 : vector<8x128xf32>
    %cst_27 = arith.constant dense<0.000000e+00> : vector<8x128xf32>
    %50 = tpu.matmul %47, %49, %cst_27 {dimension_numbers = #tpu.dot_dimension_numbers<[1], [0], [0], [1], [0, 0, 1, 1], [], []>} : vector<8x8xf32>, vector<8x128xf32>, vector<8x128xf32> -> vector<8x128xf32>
    %51 = arith.addf %25, %50 : vector<8x128xf32>
    %c32_i32_28 = arith.constant 32 : i32
    %52 = vector.broadcast %c32_i32_28 : i32 to vector<1x128xi32>
    %53 = arith.cmpi sge, %24, %52 : vector<1x128xi32>
    %c64_i32 = arith.constant 64 : i32
    %54 = vector.broadcast %c64_i32 : i32 to vector<1x128xi32>
    %55 = arith.cmpi slt, %24, %54 : vector<1x128xi32>
    %56 = arith.andi %53, %55 : vector<1x128xi1>
    %57 = arith.extui %56 : vector<1x128xi1> to vector<1x128xi32>
    %58 = arith.sitofp %57 : vector<1x128xi32> to vector<1x128xf32>
    %cst_29 = arith.constant 0.176776692 : f32
    %59 = vector.broadcast %cst_29 : f32 to vector<1x128xf32>
    %60 = arith.mulf %58, %59 : vector<1x128xf32>
    %61 = vector.broadcast %60 : vector<1x128xf32> to vector<8x128xf32>
    %62 = arith.mulf %11, %61 : vector<8x128xf32>
    "tpu.trace_start"() <{level = 10 : i32, message = "qd,kd->qk"}> : () -> ()
    %cst_30 = arith.constant dense<0.000000e+00> : vector<8x8xf32>
    %63 = tpu.matmul %62, %17, %cst_30 {dimension_numbers = #tpu.dot_dimension_numbers<[1], [1], [0], [0], [0, 0, 1, 0], [], []>} : vector<8x128xf32>, vector<8x128xf32>, vector<8x8xf32> -> vector<8x8xf32>
    "tpu.trace_stop"() : () -> ()
    %cst_31 = arith.constant dense<0xFF800000> : vector<8xf32>
    %64 = vector.multi_reduction <maximumf>, %63, %cst_31 [1] : vector<8x8xf32> to vector<8xf32>
    %65 = vector.shape_cast %64 : vector<8xf32> to vector<8x1xf32>
    %66 = vector.broadcast %65 : vector<8x1xf32> to vector<8x8xf32>
    %67 = arith.subf %63, %66 : vector<8x8xf32>
    %68 = math.exp %67 : vector<8x8xf32>
    %cst_32 = arith.constant dense<0.000000e+00> : vector<8xf32>
    %69 = vector.multi_reduction <add>, %68, %cst_32 [1] : vector<8x8xf32> to vector<8xf32>
    %70 = vector.shape_cast %69 : vector<8xf32> to vector<8x1xf32>
    %71 = tpu.reciprocal %70 : vector<8x1xf32> -> vector<8x1xf32>
    %72 = vector.broadcast %71 : vector<8x1xf32> to vector<8x8xf32>
    %73 = arith.mulf %68, %72 : vector<8x8xf32>
    %74 = vector.broadcast %58 : vector<1x128xf32> to vector<8x128xf32>
    %75 = arith.mulf %23, %74 : vector<8x128xf32>
    %cst_33 = arith.constant dense<0.000000e+00> : vector<8x128xf32>
    %76 = tpu.matmul %73, %75, %cst_33 {dimension_numbers = #tpu.dot_dimension_numbers<[1], [0], [0], [1], [0, 0, 1, 1], [], []>} : vector<8x8xf32>, vector<8x128xf32>, vector<8x128xf32> -> vector<8x128xf32>
    %77 = arith.addf %51, %76 : vector<8x128xf32>
    %c64_i32_34 = arith.constant 64 : i32
    %78 = vector.broadcast %c64_i32_34 : i32 to vector<1x128xi32>
    %79 = arith.cmpi sge, %24, %78 : vector<1x128xi32>
    %c96_i32 = arith.constant 96 : i32
    %80 = vector.broadcast %c96_i32 : i32 to vector<1x128xi32>
    %81 = arith.cmpi slt, %24, %80 : vector<1x128xi32>
    %82 = arith.andi %79, %81 : vector<1x128xi1>
    %83 = arith.extui %82 : vector<1x128xi1> to vector<1x128xi32>
    %84 = arith.sitofp %83 : vector<1x128xi32> to vector<1x128xf32>
    %cst_35 = arith.constant 0.176776692 : f32
    %85 = vector.broadcast %cst_35 : f32 to vector<1x128xf32>
    %86 = arith.mulf %84, %85 : vector<1x128xf32>
    %87 = vector.broadcast %86 : vector<1x128xf32> to vector<8x128xf32>
    %88 = arith.mulf %11, %87 : vector<8x128xf32>
    "tpu.trace_start"() <{level = 10 : i32, message = "qd,kd->qk"}> : () -> ()
    %cst_36 = arith.constant dense<0.000000e+00> : vector<8x8xf32>
    %89 = tpu.matmul %88, %17, %cst_36 {dimension_numbers = #tpu.dot_dimension_numbers<[1], [1], [0], [0], [0, 0, 1, 0], [], []>} : vector<8x128xf32>, vector<8x128xf32>, vector<8x8xf32> -> vector<8x8xf32>
    "tpu.trace_stop"() : () -> ()
    %cst_37 = arith.constant dense<0xFF800000> : vector<8xf32>
    %90 = vector.multi_reduction <maximumf>, %89, %cst_37 [1] : vector<8x8xf32> to vector<8xf32>
    %91 = vector.shape_cast %90 : vector<8xf32> to vector<8x1xf32>
    %92 = vector.broadcast %91 : vector<8x1xf32> to vector<8x8xf32>
    %93 = arith.subf %89, %92 : vector<8x8xf32>
    %94 = math.exp %93 : vector<8x8xf32>
    %cst_38 = arith.constant dense<0.000000e+00> : vector<8xf32>
    %95 = vector.multi_reduction <add>, %94, %cst_38 [1] : vector<8x8xf32> to vector<8xf32>
    %96 = vector.shape_cast %95 : vector<8xf32> to vector<8x1xf32>
    %97 = tpu.reciprocal %96 : vector<8x1xf32> -> vector<8x1xf32>
    %98 = vector.broadcast %97 : vector<8x1xf32> to vector<8x8xf32>
    %99 = arith.mulf %94, %98 : vector<8x8xf32>
    %100 = vector.broadcast %84 : vector<1x128xf32> to vector<8x128xf32>
    %101 = arith.mulf %23, %100 : vector<8x128xf32>
    %cst_39 = arith.constant dense<0.000000e+00> : vector<8x128xf32>
    %102 = tpu.matmul %99, %101, %cst_39 {dimension_numbers = #tpu.dot_dimension_numbers<[1], [0], [0], [1], [0, 0, 1, 1], [], []>} : vector<8x8xf32>, vector<8x128xf32>, vector<8x128xf32> -> vector<8x128xf32>
    %103 = arith.addf %77, %102 : vector<8x128xf32>
    %c96_i32_40 = arith.constant 96 : i32
    %104 = vector.broadcast %c96_i32_40 : i32 to vector<1x128xi32>
    %105 = arith.cmpi sge, %24, %104 : vector<1x128xi32>
    %c128_i32 = arith.constant 128 : i32
    %106 = vector.broadcast %c128_i32 : i32 to vector<1x128xi32>
    %107 = arith.cmpi slt, %24, %106 : vector<1x128xi32>
    %108 = arith.andi %105, %107 : vector<1x128xi1>
    %109 = arith.extui %108 : vector<1x128xi1> to vector<1x128xi32>
    %110 = arith.sitofp %109 : vector<1x128xi32> to vector<1x128xf32>
    %cst_41 = arith.constant 0.176776692 : f32
    %111 = vector.broadcast %cst_41 : f32 to vector<1x128xf32>
    %112 = arith.mulf %110, %111 : vector<1x128xf32>
    %113 = vector.broadcast %112 : vector<1x128xf32> to vector<8x128xf32>
    %114 = arith.mulf %11, %113 : vector<8x128xf32>
    "tpu.trace_start"() <{level = 10 : i32, message = "qd,kd->qk"}> : () -> ()
    %cst_42 = arith.constant dense<0.000000e+00> : vector<8x8xf32>
    %115 = tpu.matmul %114, %17, %cst_42 {dimension_numbers = #tpu.dot_dimension_numbers<[1], [1], [0], [0], [0, 0, 1, 0], [], []>} : vector<8x128xf32>, vector<8x128xf32>, vector<8x8xf32> -> vector<8x8xf32>
    "tpu.trace_stop"() : () -> ()
    %cst_43 = arith.constant dense<0xFF800000> : vector<8xf32>
    %116 = vector.multi_reduction <maximumf>, %115, %cst_43 [1] : vector<8x8xf32> to vector<8xf32>
    %117 = vector.shape_cast %116 : vector<8xf32> to vector<8x1xf32>
    %118 = vector.broadcast %117 : vector<8x1xf32> to vector<8x8xf32>
    %119 = arith.subf %115, %118 : vector<8x8xf32>
    %120 = math.exp %119 : vector<8x8xf32>
    %cst_44 = arith.constant dense<0.000000e+00> : vector<8xf32>
    %121 = vector.multi_reduction <add>, %120, %cst_44 [1] : vector<8x8xf32> to vector<8xf32>
    %122 = vector.shape_cast %121 : vector<8xf32> to vector<8x1xf32>
    %123 = tpu.reciprocal %122 : vector<8x1xf32> -> vector<8x1xf32>
    %124 = vector.broadcast %123 : vector<8x1xf32> to vector<8x8xf32>
    %125 = arith.mulf %120, %124 : vector<8x8xf32>
    %126 = vector.broadcast %110 : vector<1x128xf32> to vector<8x128xf32>
    %127 = arith.mulf %23, %126 : vector<8x128xf32>
    %cst_45 = arith.constant dense<0.000000e+00> : vector<8x128xf32>
    %128 = tpu.matmul %125, %127, %cst_45 {dimension_numbers = #tpu.dot_dimension_numbers<[1], [0], [0], [1], [0, 0, 1, 1], [], []>} : vector<8x8xf32>, vector<8x128xf32>, vector<8x128xf32> -> vector<8x128xf32>
    %129 = arith.addf %103, %128 : vector<8x128xf32>
    %c0_46 = arith.constant 0 : index
    %c0_47 = arith.constant 0 : index
    %130 = vector.load %arg10[%c0_46, %c0_47] : memref<128x128xbf16, #tpu.memory_space<vmem>>, vector<128x128xbf16>
    %131 = arith.truncf %129 : vector<8x128xf32> to vector<8x128xbf16>
    %cst_48 = arith.constant dense<0.000000e+00> : vector<8x128xf32>
    %132 = tpu.matmul %131, %130, %cst_48 {dimension_numbers = #tpu.dot_dimension_numbers<[1], [0], [0], [1], [0, 0, 1, 1], [], []>} : vector<8x128xbf16>, vector<128x128xbf16>, vector<8x128xf32> -> vector<8x128xf32>
    %c0_49 = arith.constant 0 : index
    %c0_50 = arith.constant 0 : index
    %133 = vector.load %arg11[%c0_49, %c0_50] : memref<1x128xf32, #tpu.memory_space<vmem>>, vector<1x128xf32>
    %134 = vector.broadcast %133 : vector<1x128xf32> to vector<8x128xf32>
    %135 = arith.addf %132, %134 : vector<8x128xf32>
    %136 = arith.addf %135, %1 : vector<8x128xf32>
    %c0_51 = arith.constant 0 : index
    %c0_52 = arith.constant 0 : index
    %137 = vector.load %arg12[%c0_51, %c0_52] : memref<1x128xf32, #tpu.memory_space<vmem>>, vector<1x128xf32>
    %c0_53 = arith.constant 0 : index
    %c0_54 = arith.constant 0 : index
    %138 = vector.load %arg13[%c0_53, %c0_54] : memref<1x128xf32, #tpu.memory_space<vmem>>, vector<1x128xf32>
    %cst_55 = arith.constant dense<0.000000e+00> : vector<8xf32>
    %139 = vector.multi_reduction <add>, %136, %cst_55 [1] : vector<8x128xf32> to vector<8xf32>
    %140 = vector.shape_cast %139 : vector<8xf32> to vector<8x1xf32>
    %cst_56 = arith.constant 1.280000e+02 : f32
    %141 = vector.broadcast %cst_56 : f32 to vector<8x1xf32>
    %142 = arith.divf %140, %141 : vector<8x1xf32>
    %143 = vector.broadcast %142 : vector<8x1xf32> to vector<8x128xf32>
    %144 = arith.subf %136, %143 : vector<8x128xf32>
    %145 = arith.mulf %144, %144 : vector<8x128xf32>
    %cst_57 = arith.constant dense<0.000000e+00> : vector<8xf32>
    %146 = vector.multi_reduction <add>, %145, %cst_57 [1] : vector<8x128xf32> to vector<8xf32>
    %147 = vector.shape_cast %146 : vector<8xf32> to vector<8x1xf32>
    %cst_58 = arith.constant 1.280000e+02 : f32
    %148 = vector.broadcast %cst_58 : f32 to vector<8x1xf32>
    %149 = arith.divf %147, %148 : vector<8x1xf32>
    %cst_59 = arith.constant 9.99999996E-13 : f32
    %150 = vector.broadcast %cst_59 : f32 to vector<8x1xf32>
    %151 = arith.addf %149, %150 : vector<8x1xf32>
    %152 = math.rsqrt %151 : vector<8x1xf32>
    %153 = vector.broadcast %152 : vector<8x1xf32> to vector<8x128xf32>
    %154 = arith.mulf %144, %153 : vector<8x128xf32>
    %155 = vector.broadcast %137 : vector<1x128xf32> to vector<8x128xf32>
    %156 = arith.mulf %154, %155 : vector<8x128xf32>
    %157 = vector.broadcast %138 : vector<1x128xf32> to vector<8x128xf32>
    %158 = arith.addf %156, %157 : vector<8x128xf32>
    %c0_60 = arith.constant 0 : index
    %c0_61 = arith.constant 0 : index
    %159 = vector.load %arg14[%c0_60, %c0_61] : memref<128x256xbf16, #tpu.memory_space<vmem>>, vector<128x256xbf16>
    %160 = arith.truncf %158 : vector<8x128xf32> to vector<8x128xbf16>
    %cst_62 = arith.constant dense<0.000000e+00> : vector<8x256xf32>
    %161 = tpu.matmul %160, %159, %cst_62 {dimension_numbers = #tpu.dot_dimension_numbers<[1], [0], [0], [1], [0, 0, 1, 1], [], []>} : vector<8x128xbf16>, vector<128x256xbf16>, vector<8x256xf32> -> vector<8x256xf32>
    %c0_63 = arith.constant 0 : index
    %c0_64 = arith.constant 0 : index
    %162 = vector.load %arg15[%c0_63, %c0_64] : memref<1x256xf32, #tpu.memory_space<vmem>>, vector<1x256xf32>
    %163 = vector.broadcast %162 : vector<1x256xf32> to vector<8x256xf32>
    %164 = arith.addf %161, %163 : vector<8x256xf32>
    %cst_65 = arith.constant 5.000000e-01 : f32
    %165 = vector.broadcast %cst_65 : f32 to vector<8x256xf32>
    %166 = arith.mulf %165, %164 : vector<8x256xf32>
    %cst_66 = arith.constant 4.471500e-02 : f32
    %167 = vector.broadcast %cst_66 : f32 to vector<8x256xf32>
    %168 = arith.mulf %167, %164 : vector<8x256xf32>
    %169 = arith.mulf %168, %164 : vector<8x256xf32>
    %170 = arith.mulf %169, %164 : vector<8x256xf32>
    %171 = arith.addf %164, %170 : vector<8x256xf32>
    %cst_67 = arith.constant 0.797884583 : f32
    %172 = vector.broadcast %cst_67 : f32 to vector<8x256xf32>
    %173 = arith.mulf %172, %171 : vector<8x256xf32>
    %174 = math.tanh %173 : vector<8x256xf32>
    %cst_68 = arith.constant 1.000000e+00 : f32
    %175 = vector.broadcast %cst_68 : f32 to vector<8x256xf32>
    %176 = arith.addf %175, %174 : vector<8x256xf32>
    %177 = arith.mulf %166, %176 : vector<8x256xf32>
    %c0_69 = arith.constant 0 : index
    %c0_70 = arith.constant 0 : index
    %178 = vector.load %arg16[%c0_69, %c0_70] : memref<256x128xbf16, #tpu.memory_space<vmem>>, vector<256x128xbf16>
    %179 = arith.truncf %177 : vector<8x256xf32> to vector<8x256xbf16>
    %cst_71 = arith.constant dense<0.000000e+00> : vector<8x128xf32>
    %180 = tpu.matmul %179, %178, %cst_71 {dimension_numbers = #tpu.dot_dimension_numbers<[1], [0], [0], [1], [0, 0, 1, 1], [], []>} : vector<8x256xbf16>, vector<256x128xbf16>, vector<8x128xf32> -> vector<8x128xf32>
    %c0_72 = arith.constant 0 : index
    %c0_73 = arith.constant 0 : index
    %181 = vector.load %arg17[%c0_72, %c0_73] : memref<1x128xf32, #tpu.memory_space<vmem>>, vector<1x128xf32>
    %182 = vector.broadcast %181 : vector<1x128xf32> to vector<8x128xf32>
    %183 = arith.addf %180, %182 : vector<8x128xf32>
    %184 = arith.addf %183, %158 : vector<8x128xf32>
    %c0_74 = arith.constant 0 : index
    %c0_75 = arith.constant 0 : index
    %185 = vector.load %arg18[%c0_74, %c0_75] : memref<1x128xf32, #tpu.memory_space<vmem>>, vector<1x128xf32>
    %c0_76 = arith.constant 0 : index
    %c0_77 = arith.constant 0 : index
    %186 = vector.load %arg19[%c0_76, %c0_77] : memref<1x128xf32, #tpu.memory_space<vmem>>, vector<1x128xf32>
    %cst_78 = arith.constant dense<0.000000e+00> : vector<8xf32>
    %187 = vector.multi_reduction <add>, %184, %cst_78 [1] : vector<8x128xf32> to vector<8xf32>
    %188 = vector.shape_cast %187 : vector<8xf32> to vector<8x1xf32>
    %cst_79 = arith.constant 1.280000e+02 : f32
    %189 = vector.broadcast %cst_79 : f32 to vector<8x1xf32>
    %190 = arith.divf %188, %189 : vector<8x1xf32>
    %191 = vector.broadcast %190 : vector<8x1xf32> to vector<8x128xf32>
    %192 = arith.subf %184, %191 : vector<8x128xf32>
    %193 = arith.mulf %192, %192 : vector<8x128xf32>
    %cst_80 = arith.constant dense<0.000000e+00> : vector<8xf32>
    %194 = vector.multi_reduction <add>, %193, %cst_80 [1] : vector<8x128xf32> to vector<8xf32>
    %195 = vector.shape_cast %194 : vector<8xf32> to vector<8x1xf32>
    %cst_81 = arith.constant 1.280000e+02 : f32
    %196 = vector.broadcast %cst_81 : f32 to vector<8x1xf32>
    %197 = arith.divf %195, %196 : vector<8x1xf32>
    %cst_82 = arith.constant 9.99999996E-13 : f32
    %198 = vector.broadcast %cst_82 : f32 to vector<8x1xf32>
    %199 = arith.addf %197, %198 : vector<8x1xf32>
    %200 = math.rsqrt %199 : vector<8x1xf32>
    %201 = vector.broadcast %200 : vector<8x1xf32> to vector<8x128xf32>
    %202 = arith.mulf %192, %201 : vector<8x128xf32>
    %203 = vector.broadcast %185 : vector<1x128xf32> to vector<8x128xf32>
    %204 = arith.mulf %202, %203 : vector<8x128xf32>
    %205 = vector.broadcast %186 : vector<1x128xf32> to vector<8x128xf32>
    %206 = arith.addf %204, %205 : vector<8x128xf32>
    %c0_83 = arith.constant 0 : index
    %c0_84 = arith.constant 0 : index
    %c0_85 = arith.constant 0 : index
    %207 = vector.load %arg20[%c0_83, %c0_84, %c0_85] : memref<1x8x128xf32, #tpu.memory_space<vmem>>, vector<1x8x128xf32>
    %208 = vector.shape_cast %207 : vector<1x8x128xf32> to vector<8x128xf32>
    %209 = vector.shape_cast %206 : vector<8x128xf32> to vector<1x8x128xf32>
    tpu.vector_store %arg20[%c0_83, %c0_84, %c0_85], %209 {strides = array<i32>} : memref<1x8x128xf32, #tpu.memory_space<vmem>>, vector<1x8x128xf32>,
    return
  }
  func.func @transform_0(%arg0: i32) -> (i32, i32, i32) {
    %c0_i32 = arith.constant 0 : i32
    %c0_i32_0 = arith.constant 0 : i32
    %c0_i32_1 = arith.constant 0 : i32
    return %arg0, %c0_i32, %c0_i32_0 : i32, i32, i32
  }
  func.func @transform_1(%arg0: i32) -> (i32, i32, i32) {
    %c0_i32 = arith.constant 0 : i32
    %c0_i32_0 = arith.constant 0 : i32
    %c0_i32_1 = arith.constant 0 : i32
    return %arg0, %c0_i32, %c0_i32_0 : i32, i32, i32
  }
  func.func @transform_2(%arg0: i32) -> (i32, i32, i32) {
    %c0_i32 = arith.constant 0 : i32
    %c0_i32_0 = arith.constant 0 : i32
    %c0_i32_1 = arith.constant 0 : i32
    return %arg0, %c0_i32, %c0_i32_0 : i32, i32, i32
  }
  func.func @transform_3(%arg0: i32) -> (i32, i32) {
    %c0_i32 = arith.constant 0 : i32
    %c0_i32_0 = arith.constant 0 : i32
    %c0_i32_1 = arith.constant 0 : i32
    return %c0_i32, %c0_i32_0 : i32, i32
  }
  func.func @transform_4(%arg0: i32) -> (i32, i32) {
    %c0_i32 = arith.constant 0 : i32
    %c0_i32_0 = arith.constant 0 : i32
    %c0_i32_1 = arith.constant 0 : i32
    return %c0_i32, %c0_i32_0 : i32, i32
  }
  func.func @transform_5(%arg0: i32) -> (i32, i32) {
    %c0_i32 = arith.constant 0 : i32
    %c0_i32_0 = arith.constant 0 : i32
    %c0_i32_1 = arith.constant 0 : i32
    return %c0_i32, %c0_i32_0 : i32, i32
  }
  func.func @transform_6(%arg0: i32) -> (i32, i32) {
    %c0_i32 = arith.constant 0 : i32
    %c0_i32_0 = arith.constant 0 : i32
    %c0_i32_1 = arith.constant 0 : i32
    return %c0_i32, %c0_i32_0 : i32, i32
  }
  func.func @transform_7(%arg0: i32) -> (i32, i32) {
    %c0_i32 = arith.constant 0 : i32
    %c0_i32_0 = arith.constant 0 : i32
    %c0_i32_1 = arith.constant 0 : i32
    return %c0_i32, %c0_i32_0 : i32, i32
  }
  func.func @transform_8(%arg0: i32) -> (i32, i32) {
    %c0_i32 = arith.constant 0 : i32
    %c0_i32_0 = arith.constant 0 : i32
    %c0_i32_1 = arith.constant 0 : i32
    return %c0_i32, %c0_i32_0 : i32, i32
  }
  func.func @transform_9(%arg0: i32) -> (i32, i32) {
    %c0_i32 = arith.constant 0 : i32
    %c0_i32_0 = arith.constant 0 : i32
    %c0_i32_1 = arith.constant 0 : i32
    return %c0_i32, %c0_i32_0 : i32, i32
  }
  func.func @transform_10(%arg0: i32) -> (i32, i32) {
    %c0_i32 = arith.constant 0 : i32
    %c0_i32_0 = arith.constant 0 : i32
    %c0_i32_1 = arith.constant 0 : i32
    return %c0_i32, %c0_i32_0 : i32, i32
  }
  func.func @transform_11(%arg0: i32) -> (i32, i32) {
    %c0_i32 = arith.constant 0 : i32
    %c0_i32_0 = arith.constant 0 : i32
    %c0_i32_1 = arith.constant 0 : i32
    return %c0_i32, %c0_i32_0 : i32, i32
  }
  func.func @transform_12(%arg0: i32) -> (i32, i32) {
    %c0_i32 = arith.constant 0 : i32
    %c0_i32_0 = arith.constant 0 : i32
    %c0_i32_1 = arith.constant 0 : i32
    return %c0_i32, %c0_i32_0 : i32, i32
  }
  func.func @transform_13(%arg0: i32) -> (i32, i32) {
    %c0_i32 = arith.constant 0 : i32
    %c0_i32_0 = arith.constant 0 : i32
    %c0_i32_1 = arith.constant 0 : i32
    return %c0_i32, %c0_i32_0 : i32, i32
  }
  func.func @transform_14(%arg0: i32) -> (i32, i32) {
    %c0_i32 = arith.constant 0 : i32
    %c0_i32_0 = arith.constant 0 : i32
    %c0_i32_1 = arith.constant 0 : i32
    return %c0_i32, %c0_i32_0 : i32, i32
  }
  func.func @transform_15(%arg0: i32) -> (i32, i32) {
    %c0_i32 = arith.constant 0 : i32
    %c0_i32_0 = arith.constant 0 : i32
    %c0_i32_1 = arith.constant 0 : i32
    return %c0_i32, %c0_i32_0 : i32, i32
  }
  func.func @transform_16(%arg0: i32) -> (i32, i32) {
    %c0_i32 = arith.constant 0 : i32
    %c0_i32_0 = arith.constant 0 : i32
    %c0_i32_1 = arith.constant 0 : i32
    return %c0_i32, %c0_i32_0 : i32, i32
  }
  func.func @transform_17(%arg0: i32) -> (i32, i32) {
    %c0_i32 = arith.constant 0 : i32
    %c0_i32_0 = arith.constant 0 : i32
    %c0_i32_1 = arith.constant 0 : i32
    return %c0_i32, %c0_i32_0 : i32, i32
  }
  func.func @transform_18(%arg0: i32) -> (i32, i32) {
    %c0_i32 = arith.constant 0 : i32
    %c0_i32_0 = arith.constant 0 : i32
    %c0_i32_1 = arith.constant 0 : i32
    return %c0_i32, %c0_i32_0 : i32, i32
  }
  func.func @transform_19(%arg0: i32) -> (i32, i32, i32) {
    %c0_i32 = arith.constant 0 : i32
    %c0_i32_0 = arith.constant 0 : i32
    %c0_i32_1 = arith.constant 0 : i32
    return %arg0, %c0_i32, %c0_i32_0 : i32, i32, i32
  }
}

</mosaic_0001>

<bundles_post_ra>
// kernel: tpu_custom_call.1
= control target key start
LH: loop header
LB: loop body
LE: loop exit
PB: predicated region body
PF: predicated region fallthrough
CT: control target
= control target key end

     0   :  { %s3319_s0 = inlined_call_operand.hbm [shape: f32[2,8,128], index: 0, kind: input, shape index: {}]   ;;  %s3320_s1 = inlined_call_operand.hbm [shape: f32[2,8,128], index: 1, kind: input, shape index: {}]   ;;  %s3321_s2 = inlined_call_operand.hbm [shape: f32[2,8,128], index: 2, kind: input, shape index: {}]   ;;  %s3322_s3 = inlined_call_operand.hbm [shape: bf16[128,128], index: 3, kind: input, shape index: {}]   ;;  %s3323_s4 = inlined_call_operand.vmem [shape: f32[1,128], index: 4, kind: input, shape index: {}]   ;;  %s3324_s5 = inlined_call_operand.hbm [shape: bf16[128,128], index: 5, kind: input, shape index: {}]   ;;  %s3325_s6 = inlined_call_operand.vmem [shape: f32[1,128], index: 6, kind: input, shape index: {}]   ;;  %s3326_s7 = inlined_call_operand.hbm [shape: bf16[128,128], index: 7, kind: input, shape index: {}]   ;;  %s3327_s8 = inlined_call_operand.vmem [shape: f32[1,128], index: 8, kind: input, shape index: {}]   ;;  %s3328_s9 = inlined_call_operand.hbm [shape: bf16[128,128], index: 9, kind: input, shape index: {}]   ;;  %s3329_s10 = inlined_call_operand.vmem [shape: f32[1,128], index: 10, kind: input, shape index: {}]   ;;  %s3330_s11 = inlined_call_operand.vmem [shape: f32[1,128], index: 11, kind: input, shape index: {}]   ;;  %s3331_s12 = inlined_call_operand.vmem [shape: f32[1,128], index: 12, kind: input, shape index: {}]   ;;  %s3332_s13 = inlined_call_operand.hbm [shape: bf16[128,256], index: 13, kind: input, shape index: {}]   ;;  %s3333_s14 = inlined_call_operand.vmem [shape: f32[1,256], index: 14, kind: input, shape index: {}]   ;;  %s3334_s15 = inlined_call_operand.hbm [shape: bf16[256,128], index: 15, kind: input, shape index: {}]   ;;  %s3335_s16 = inlined_call_operand.vmem [shape: f32[1,128], index: 16, kind: input, shape index: {}]   ;;  %s3336_s17 = inlined_call_operand.vmem [shape: f32[1,128], index: 17, kind: input, shape index: {}]   ;;  %s3337_s18 = inlined_call_operand.vmem [shape: f32[1,128], index: 18, kind: input, shape index: {}]   ;;  %s3338_s19 = inlined_call_operand.hbm [shape: f32[2,8,128], index: 19, kind: output, shape index: {}]  }
   0x1   :  { %3356 = sst [smem:[#allocation30_spill]] %s3319_s0 }
   0x2   :  { %3357 = sst [smem:[#allocation31_spill]] %s3320_s1 }
   0x3   :  { %3358 = sst [smem:[#allocation32_spill]] %s3321_s2 }
   0x4   :  { %3359 = sst [smem:[#allocation33_spill]] %s3322_s3 }
   0x5   :  { %3360 = sst [smem:[#allocation34_spill]] %s3324_s5 }
   0x6   :  { %3361 = sst [smem:[#allocation35_spill]] %s3326_s7 }
   0x7   :  { %3362 = sst [smem:[#allocation36_spill]] %s3328_s9 }
   0x8   :  { %3363 = sst [smem:[#allocation37_spill]] %s3330_s11 }
   0x9   :  { %3364 = sst [smem:[#allocation38_spill]] %s3331_s12 }
   0xa   :  { %3365 = sst [smem:[#allocation39_spill]] %s3332_s13 }
   0xb   :  { %3366 = sst [smem:[#allocation40_spill]] %s3333_s14 }
   0xc   :  { %3367 = sst [smem:[#allocation41_spill]] %s3335_s16 }
   0xd   :  { %3368 = sst [smem:[#allocation42_spill]] %s3336_s17 }
   0xe   :  { %3369 = sst [smem:[#allocation43_spill]] %s3337_s18 }
   0xf   :  { %3370 = sst [smem:[#allocation44_spill]] %s3338_s19 }
  0x10   :  { %24 = vsyncpa [#allocation3], 0 }
  0x11   :  { %26 = vsyncpa [#allocation3 + $0x1], 0 }
  0x12   :  { %27 = vsyncpa [#allocation6], 0 }
  0x13   :  { %29 = vsyncpa [#allocation6 + $0x1], 0 }
  0x14   :  { %30 = vsyncpa [#allocation9], 0 }
  0x15   :  { %31 = vsyncpa [#allocation12], 0 }
  0x16   :  { %32 = vsyncpa [#allocation15], 0 }
  0x17   :  { %33 = vsyncpa [#allocation4], 0 }
  0x18   :  { %35 = vsyncpa [#allocation4 + $0x1], 0  ;;  %s2975_s0 = smov 0   ;;  %s2977_s30 = smov 0  }
  0x19   :  { %s2979_s20 = smov 0   ;;  %s2981_s21 = smov 0  }
  0x1a LB: > { %3371 = sst [smem:[#allocation24_spill]] %s2849_s0  ;;  %s2999_s24 = sadd.s32 4294967295, %s2861_s21   ;;  %s2861_s21 = sphi %s2981_s21, %s3413_s21   ;;  %s2857_s20 = sphi %s2979_s20, %s3417_s20   ;;  %s2853_s30 = sphi %s2977_s30, %s3416_s30   ;;  %s2849_s0 = sphi %s2975_s0, %s3415_s0  }
  0x1b   : > { %3372 = sst [smem:[#allocation25_spill]] %s2861_s21  ;;  %p1994_p0 = scmp.ge.s32.totalorder %s2861_s21, 1 }
  0x1c   : > { %s3373_s2 = sld [smem:[#allocation33_spill]]  ;;  %p3355_p1 = scmp.eq.s32.totalorder %s2999_s24, 0 }
  0x1d   : > { %p486_p2 = scmp.lt.s32.totalorder %s2861_s21, 3  ;;  %s2863_s3 = smov [#allocation8]  }
  0x1e   : > { %s499_s26 = sshll.u32 %s2863_s3, 4  ;;  %s3375_s7 = sld [smem:[#allocation35_spill]]  ;;  %s500_s26 = int_to_ptr.vmem [resolvable:$true] %s499_s26 }
  0x1f   : > { %p3004_p3 = pnand %p1994_p0, %p486_p2  ;;  %s3377_s13 = sld [smem:[#allocation39_spill]] }
  0x20   : > { %s2864_s18 = smov [#allocation11]   ;;  %s3343_s27 = smov 64  }
  0x21   : > { %p2383_p4 = pneg %p3004_p3  ;;  %s533_s19 = sshll.u32 %s2864_s18, 4  ;;  %s534_s19 = int_to_ptr.vmem [resolvable:$true] %s533_s19 }
  0x22   : > { %s497_s23 = sshll.u32 %s3373_s2, 4  ;;  %s3345_s28 = smov 4   ;;  %s498_s23 = int_to_ptr.hbm [resolvable:$true] %s497_s23 }
  0x23   : > { %p3016_p6 = pnand %p2383_p4, %p3355_p1  ;;  %s2867_s18 = smov [#allocation14]  }
  0x24   : > { %s531_s29 = sshll.u32 %s3375_s7, 4  ;;  %s573_s22 = sshll.u32 %s2867_s18, 4  ;;  %s532_s29 = int_to_ptr.hbm [resolvable:$true] %s531_s29  ;;  %s574_s22 = int_to_ptr.vmem [resolvable:$true] %s573_s22 }
  0x25   : > { %s571_s3 = sshll.u32 %s3377_s13, 4  ;;  %s2868_s2 = smov 128   ;;  %s572_s3 = int_to_ptr.hbm [resolvable:$true] %s571_s3 }
  0x26   : > { %2386 = dma.hbm_to_vmem [thread:$0]  (!%p3016_p6), %s498_s23, 1024, %s500_s26, [#allocation9], %s3343_s27, %s3343_s27, %s3345_s28  }
  0x27   : > { %2392 = dma.hbm_to_vmem [thread:$0]  (!%p3016_p6), %s532_s29, 1024, %s534_s19, [#allocation12], %s3343_s27, %s3343_s27, %s3345_s28  }
  0x28   : > { %s2869_s7 = smov 8   ;;  %s1993_s23 = sadd.s32 4294967294, %s2861_s21  }
  0x29   : > { %2398 = dma.hbm_to_vmem [thread:$0]  (!%p3016_p6), %s572_s3, 2048, %s574_s22, [#allocation15], %s2868_s2, %s2868_s2, %s2869_s7  }
  0x2a   : > { %s3037_s26 = sadd.s32 1, %s2861_s21   ;;  %s48_s13 = sadd.s32 1, %s2857_s20 }
  0x2b   : > { %3378 = sst [smem:[#allocation26_spill]] %s3037_s26  ;;  %s45_s17 = ssub.s32 %s2861_s21, %s3037_s26 }
  0x2c   : > { %p55_p7 = scmp.ne.s32.totalorder %s2857_s20, %s2853_s30  ;;  %p46_p8 = scmp.eq.s32.totalorder %s45_s17, 0 }
  0x2d   : > { %p56_p9 = scmp.eq.s32.totalorder %s2861_s21, 0  ;;  %p61_p10 = scmp.ne.s32.totalorder %s2853_s30, %s2849_s0 }
  0x2e   : > { %p473_p11 = scmp.eq.s32.totalorder %s2999_s24, 1  ;;  %p479_p2 = scmp.eq.s32.totalorder %s1993_s23, 1 }
  0x2f   : > { %s3049_s19 = scalar_select %p46_p8, %s2857_s20, %s48_s13  }
  0x30   : > { %p57_p12 = por %p56_p9, %p55_p7  ;;  %p3053_p13 = por %p3355_p1, %p61_p10 }
  0x31   : > { %3379 = sst [smem:[#allocation27_spill]] %s3049_s19  ;;  %p3057_p0 = por %p473_p11, %p55_p7 }
  0x32   : > { %p2422_p4 = scmp.lt.s32.totalorder %s2861_s21, 2  ;;  %s3351_s3 = sand.u32 1, %s2857_s20  }
  0x33   : > { %s3381_s29 = scalar_select %p3057_p0, 1, 0 }
  0x34   : > { %p3063_p5 = por %p479_p2, %p61_p10  ;;  %s3069_s13 = sshll.u32 %s3351_s3, 3 }
  0x35   : > { %3382 = sst [smem:[#allocation28_spill]] %s3381_s29  ;;  %s3072_s18 = sshll.u32 %s2861_s21, 3 }
  0x36   : > { %s3383_s17 = scalar_select %p3063_p5, 1, 0 }
  0x37   : > { %p3074_p8 = pnand %p2422_p4, %p57_p12  ;;  %s632_s2 = sand.u32 1, %s2861_s21  }
  0x38   : > { %3384 = sst [smem:[#allocation29_spill]] %s3383_s17  ;;  %s636_s26 = scalar_lea.vmem [#allocation5], %s3069_s13 }
  0x39   : > { %s3386_s28 = sld [smem:[#allocation31_spill]]  ;;  %s644_s17 = sshll.u32 %s636_s26, 4  ;;  %s645_s17 = int_to_ptr.vmem [resolvable:$true] %s644_s17 }
  0x3a   : > { %s3387_s5 = sld [smem:[#allocation34_spill]]  ;;  %s3087_s14 = scalar_lea.sflag [#allocation6], %s632_s2 }
  0x3b   : > { %p2603_p9 = pneg %p3074_p8 }
  0x3f   : > { %s640_s19 = scalar_lea.hbm %s3386_s28, %s3072_s18 }
  0x40   : > { %s642_s0 = sshll.u32 %s640_s19, 4  ;;  %s514_s16 = sshll.u32 %s3387_s5, 4  ;;  %s643_s0 = int_to_ptr.hbm [resolvable:$true] %s642_s0  ;;  %s515_s16 = int_to_ptr.hbm [resolvable:$true] %s514_s16 }
  0x41   : > { %s2599_s12 = sshra.s32 %s643_s0, 4  ;;  %s2606_s19 = scalar_lea.hbm %s3386_s28, 16  ;;  %s2600_s12 = int_to_ptr.hbm [resolvable:$true] %s2599_s12 }
  0x42   : > { %s2601_s11 = scalar_lea.hbm %s2600_s12, 8  ;;  %p2607_p12 = scmp.lt.s32.totalorder %s2600_s12, %s3386_s28 }
  0x43   : > { %p2602_p7 = scmp.ne.s32.totalorder %s2600_s12, %s2601_s11  ;;  %p2608_p2 = scmp.lt.s32.totalorder %s2606_s19, %s2601_s11 }
  0x45   : > { %p2604_p10 = pnand %p2603_p9, %p2602_p7  ;;  %p2609_p4 = por %p2608_p2, %p2607_p12 }
  0x47   : > { %p2605_p11 = pneg %p2604_p10 }
  0x49   : > { %p2610_p1 = pnand %p2609_p4, %p2605_p11 }
  0x4b   : > { %2613 = shalt.err (!%p2610_p1)
}
  0x4c   : > { %2408 = dma.hbm_to_vmem [thread:$0]  (!%p3074_p8), %s643_s0, 128, %s645_s17, %s3087_s14  }
  0x4d   : > { %s2870_s29 = smov [#allocation10]   ;;  %s3388_s9 = sld [smem:[#allocation36_spill]] }
  0x4e   : > { %s516_s3 = sshll.u32 %s2870_s29, 4  ;;  %s3389_s11 = smov 4   ;;  %s517_s3 = int_to_ptr.vmem [resolvable:$true] %s516_s3 }
  0x4f   : > { %s3390_s21 = smov 64   ;;  %s588_s0 = sshll.u32 %s3334_s15, 4  ;;  %s589_s0 = int_to_ptr.hbm [resolvable:$true] %s588_s0 }
  0x50   : > { %2389 = dma.hbm_to_vmem [thread:$0]  (!%p3016_p6), %s515_s16, 1024, %s517_s3, [#allocation9], %s3390_s21, %s3390_s21, %s3389_s11  }
  0x51   : > { %s2871_s17 = smov [#allocation13]   ;;  %s2872_s29 = smov [#allocation16]  }
  0x52   : > { %s550_s23 = sshll.u32 %s2871_s17, 4  ;;  %s590_s2 = sshll.u32 %s2872_s29, 4  ;;  %s551_s23 = int_to_ptr.vmem [resolvable:$true] %s550_s23  ;;  %s591_s2 = int_to_ptr.vmem [resolvable:$true] %s590_s2 }
  0x53   : > { %s548_s12 = sshll.u32 %s3388_s9, 4  ;;  %s3391_s27 = sld [smem:[#allocation30_spill]]  ;;  %s549_s12 = int_to_ptr.hbm [resolvable:$true] %s548_s12 }
  0x54   : > { %2395 = dma.hbm_to_vmem [thread:$0]  (!%p3016_p6), %s549_s12, 1024, %s551_s23, [#allocation12], %s3390_s21, %s3390_s21, %s3389_s11  }
  0x55   : > { %2401 = dma.hbm_to_vmem [thread:$0]  (!%p3016_p6), %s589_s0, 2048, %s591_s2, [#allocation15], %s3390_s21, %s3390_s21, %s3389_s11  }
  0x56   : > { %s617_s19 = scalar_lea.vmem [#allocation2], %s3069_s13  ;;  %s3392_s9 = sand.u32 1, %s2857_s20  }
  0x57   : > { %s625_s17 = sshll.u32 %s617_s19, 4  ;;  %s614_s12 = scalar_lea.sflag [#allocation3], %s3392_s9  ;;  %s626_s17 = int_to_ptr.vmem [resolvable:$true] %s625_s17 }
  0x59   : > { %s621_s26 = scalar_lea.hbm %s3391_s27, %s3072_s18  ;;  %s2726_s21 = scalar_lea.hbm %s3391_s27, 16 }
  0x5a   : > { %s623_s5 = sshll.u32 %s621_s26, 4  ;;  %s624_s5 = int_to_ptr.hbm [resolvable:$true] %s623_s5 }
  0x5b   : > { %s2719_s23 = sshra.s32 %s624_s5, 4  ;;  %s2720_s23 = int_to_ptr.hbm [resolvable:$true] %s2719_s23 }
  0x5c   : > { %s2721_s29 = scalar_lea.hbm %s2720_s23, 8  ;;  %p2727_p6 = scmp.lt.s32.totalorder %s2720_s23, %s3391_s27 }
  0x5d   : > { %p2722_p1 = scmp.ne.s32.totalorder %s2720_s23, %s2721_s29  ;;  %p2728_p11 = scmp.lt.s32.totalorder %s2726_s21, %s2721_s29 }
  0x5f   : > { %p2724_p7 = pnand %p2722_p1, %p2603_p9  ;;  %p2729_p12 = por %p2728_p11, %p2727_p6 }
  0x61   : > { %p2725_p10 = pneg %p2724_p7 }
  0x63   : > { %p2730_p2 = pnand %p2729_p12, %p2725_p10 }
  0x65   : > { %2733 = shalt.err (!%p2730_p2)
}
  0x66   : > { %2405 = dma.hbm_to_vmem [thread:$0]  (!%p3074_p8), %s624_s5, 128, %s626_s17, %s614_s12  }
  0x67   : > { %s3393_s3 = sld [smem:[#allocation32_spill]]  ;;  %s655_s19 = scalar_lea.vmem [#allocation7], %s3069_s13 }
  0x68   : > { %s663_s1 = sshll.u32 %s655_s19, 4  ;;  %s664_s1 = int_to_ptr.vmem [resolvable:$true] %s663_s1 }
  0x6d   : > { %s659_s26 = scalar_lea.hbm %s3393_s3, %s3072_s18  ;;  %s2756_s5 = scalar_lea.hbm %s3393_s3, 16 }
  0x6e   : > { %s661_s11 = sshll.u32 %s659_s26, 4  ;;  %s662_s11 = int_to_ptr.hbm [resolvable:$true] %s661_s11 }
  0x6f   : > { %s2749_s23 = sshra.s32 %s662_s11, 4  ;;  %s2750_s23 = int_to_ptr.hbm [resolvable:$true] %s2749_s23 }
  0x70   : > { %s2751_s29 = scalar_lea.hbm %s2750_s23, 8  ;;  %p2757_p10 = scmp.lt.s32.totalorder %s2750_s23, %s3393_s3 }
  0x71   : > { %p2752_p4 = scmp.ne.s32.totalorder %s2750_s23, %s2751_s29  ;;  %p2758_p6 = scmp.lt.s32.totalorder %s2756_s5, %s2751_s29 }
  0x73   : > { %p2754_p1 = pnand %p2752_p4, %p2603_p9  ;;  %p2759_p11 = por %p2758_p6, %p2757_p10 }
  0x75   : > { %p2755_p7 = pneg %p2754_p1 }
  0x77   : > { %p2760_p12 = pnand %p2759_p11, %p2755_p7 }
  0x79   : > { %2763 = shalt.err (!%p2760_p12)
}
  0x7a   : > { %2411 = dma.hbm_to_vmem [thread:$0]  (!%p3074_p8), %s662_s11, 128, %s664_s1, %s3087_s14  }
  0x7b   : > { %672 = sbr.rel (%p3004_p3) target bundleno = 2222 (0x8ae), region = 96  ;;  %s3162_s13 = sand.u32 (!%p3004_p3), 1, %s2853_s30  }
  0x7c   : > { %s3165_s18 = sshll.u32 (!%p3004_p3), %s3162_s13, 3  ;;  %s675_s2 = scalar_lea.sflag (!%p3004_p3), [#allocation3], %s3162_s13 }
  0x7d   : > { %s678_s9 = scalar_lea.vmem (!%p3004_p3), [#allocation2], %s3165_s18 }
  0x80   : > { %2824 = dma.done.wait (%p3053_p13), %s675_s2, 128  }
  0x81   : > { %2826 = vsyncadd (%p3053_p13), %s675_s2, 4294967168  ;;  %s684_s14 = sand.u32 1, %s2999_s24   ;;  %s688_s22 = scalar_lea.vmem [#allocation5], %s3165_s18 }
  0x82   : > { %s685_s25 = scalar_lea.sflag [#allocation6], %s684_s14 }
  0x83   : > { %2828 = dma.done.wait (%p3053_p13), %s685_s25, 256  }
  0x84   : > { %2830 = vsyncadd (%p3053_p13), %s685_s25, 4294967040  ;;  %s698_s16 = scalar_lea.vmem [#allocation7], %s3165_s18  ;;  %p3394_p3 = scmp.eq.s32.totalorder %s2999_s24, 0 }
  0x86   : > { %2832 = dma.done.wait (%p3394_p3), [#allocation9], 2048   ;;  %p3395_p8 = pmov %p3394_p3 }
  0x87   : > { %p3396_p9 = pmov %p3394_p3 }
  0x88   : > { %2834 = vsyncadd (%p3395_p8), [#allocation9], 4294965248 }
  0x89   : > { %2836 = dma.done.wait (%p3396_p9), [#allocation12], 2048   ;;  %p3397_p2 = pmov %p3394_p3 }
  0x8b   : > { %2838 = vsyncadd (%p3397_p2), [#allocation12], 4294965248  ;;  %p3398_p4 = pmov %p3397_p2 }
  0x8c   : > { %p3399_p1 = pmov %p3397_p2 }
  0x8d   : > { %2840 = dma.done.wait (%p3398_p4), [#allocation15], 4096  }
  0x8e   : > { %2842 = vsyncadd (%p3399_p1), [#allocation15], 4294963200  ;;  %v2294_v0 = vld [vmem:[#allocation8 + $0x38] sm:$0xff]  ;;  %v2293_v2 = vld [vmem:[#allocation8 + $0x30] sm:$0xff]  ;;  %v1043_v20 = vlaneseq  ;;  %v2873_v22 = vmov 0.0   ;;  %vm1072_vm8 = vcmask 64512  }
  0x8f   : > { %v2302_v1 = vld [vmem:[#allocation10 + $0x38] sm:$0xff]  ;;  %866 = vmatpush.bf16.msra.mxu0 %v2294_v0  ;;  %v2301_v3 = vld [vmem:[#allocation10 + $0x30] sm:$0xff]  ;;  %v2292_v4 = vld [vmem:[#allocation8 + $0x28] sm:$0xff]  ;;  %s3400_s17 = sld [smem:[#allocation37_spill]]  ;;  %s2284_s19 = sshll.u32 %s2999_s24, 3 }
  0x90   : > { %948 = vmatpush.bf16.msra.mxu1 %v2302_v1  ;;  %v2300_v5 = vld [vmem:[#allocation10 + $0x28] sm:$0xff]  ;;  %v2291_v6 = vld [vmem:[#allocation8 + $0x20] sm:$0xff]  ;;  %v2290_v8 = vld [vmem:[#allocation8 + $0x18] sm:$0xff]  ;;  %v1044_v21 = vand.u32 127, %v1043_v20  ;;  %s3403_s26 = sld [smem:[#allocation41_spill]]  ;;  %s793_s24 = scalar_lea.vmem [#allocation17], %s3165_s18 }
  0x91   : > { %v2299_v7 = vld [vmem:[#allocation10 + $0x20] sm:$0xff]  ;;  %v2298_v9 = vld [vmem:[#allocation10 + $0x18] sm:$0xff]  ;;  %v2289_v10 = vld [vmem:[#allocation8 + $0x10] sm:$0xff]  ;;  %s3404_s23 = sld [smem:[#allocation42_spill]]  ;;  %s1820_s25 = sshll.u32 %s793_s24, 4  ;;  %s1821_s25 = int_to_ptr.vmem [resolvable:$true] %s1820_s25 }
  0x92   : > { %v2297_v11 = vld [vmem:[#allocation10 + $0x10] sm:$0xff]  ;;  %v2288_v12 = vld [vmem:[#allocation8 + $0x8] sm:$0xff]  ;;  %v2287_v14 = vld [vmem:[#allocation8] sm:$0xff]  ;;  %vm1196_vm0 = vcmp.ge.s32.totalorder %v1044_v21, 64  ;;  %vm1197_vm1 = vcmp.lt.s32.totalorder %v1044_v21, 96  ;;  %vm1046_vm3 = vcmp.lt.s32.totalorder %v1044_v21, 32 }
  0x93   : > { %867 = vmatpush.bf16.msra.mxu0 %v2293_v2  ;;  %v2296_v13 = vld [vmem:[#allocation10 + $0x8] sm:$0xff]  ;;  %v2295_v15 = vld [vmem:[#allocation10] sm:$0xff]  ;;  %v3194_v16 = vld [vmem:[%s678_s9] sm:$0xff]  ;;  %vm1272_vm4 = vcmp.ge.s32.totalorder %v1044_v21, 96  ;;  %v3202_v24 = vsel %vm1046_vm3, 1.0, %v2873_v22  ;;  %vm1098_vm5 = vcmp.ge.s32.totalorder %v1044_v21, 32 }
  0x94   : > { %949 = vmatpush.bf16.msra.mxu1 %v2301_v3  ;;  %v795_v17 = vld [vmem:[%s688_s22] sm:$0xff]  ;;  %v813_v18 = vpack.c.bf16 %v3194_v16, %v3194_v16  ;;  %vm1198_vm2 = vmand %vm1196_vm0, %vm1197_vm1  ;;  %v3204_v25 = vsel %vm1272_vm4, 1.0, %v2873_v22  ;;  %v2474_v26 = vld [vmem:[%s3323_s4] ss:$0 sm:$0xff]  ;;  %v1050_v28 = vmul.f32 0.17677669, %v3202_v24 }
  0x95   : > { %v895_v19 = vpack.c.bf16 %v795_v17, %v795_v17  ;;  %v3200_v23 = vsel %vm1198_vm2, 1.0, %v2873_v22  ;;  %v2475_v27 = vld [vmem:[%s3325_s6] ss:$0 sm:$0xff]  ;;  %v1277_v29 = vmul.f32 0.17677669, %v3204_v25  ;;  %vm1099_vm6 = vcmp.lt.s32.totalorder %v1044_v21, 64 }
  0x96   : > { %v1201_v32 = vmul.f32 0.17677669, %v3200_v23  ;;  %vm1100_vm7 = vmand %vm1098_vm5, %vm1099_vm6  ;;  %v2310_v43 = vld [vmem:[#allocation11 + $0x38] sm:$0xff]  ;;  %v2309_v44 = vld [vmem:[#allocation11 + $0x30] sm:$0xff]  ;;  %s3401_s9 = sld [smem:[#allocation38_spill]] }
  0x97   : > { %868 = vmatpush.bf16.msra.mxu0 %v2292_v4  ;;  %v2116_v38 = vsel %vm1100_vm7, 1.0, %v2873_v22  ;;  %1030 = vmatpush.bf16.msra.mxu2 %v2310_v43  ;;  %v2308_v45 = vld [vmem:[#allocation11 + $0x28] sm:$0xff]  ;;  %v2307_v46 = vld [vmem:[#allocation11 + $0x20] sm:$0xff]  ;;  %v2306_v48 = vld [vmem:[#allocation11 + $0x18] sm:$0xff]  ;;  %s3402_s22 = sld [smem:[#allocation40_spill]] }
  0x98   : > { %950 = vmatpush.bf16.msra.mxu1 %v2300_v5  ;;  %v1103_v41 = vmul.f32 0.17677669, %v2116_v38  ;;  %v2305_v49 = vld [vmem:[#allocation11 + $0x10] sm:$0xff]  ;;  %v2304_v51 = vld [vmem:[#allocation11 + $0x8] sm:$0xff]  ;;  %v2303_v53 = vld [vmem:[#allocation11] sm:$0xff]  ;;  %s3405_s0 = sld [smem:[#allocation44_spill]] }
  0x99   : > { %v796_v54 = vld [vmem:[%s698_s16] sm:$0xff]  ;;  %s3408_s14 = sld [smem:[#allocation43_spill]]  ;;  %s1808_s16 = scalar_lea.sflag [#allocation4], %s3162_s13 }
  0x9a   : > { %v977_v55 = vpack.c.bf16 %v796_v54, %v796_v54  ;;  %v2476_v5 = vld [vmem:[%s3327_s8] ss:$0 sm:$0xff] }
  0x9b   : > { %869 = vmatpush.bf16.msra.mxu0 %v2291_v6  ;;  %1031 = vmatpush.bf16.msra.mxu2 %v2309_v44  ;;  %v2317_v54 = vld [vmem:[#allocation13 + $0x30] sm:$0xff] }
  0x9c   : > { %951 = vmatpush.bf16.msra.mxu1 %v2299_v7 }
  0x9e   : > { %s3406_s5 = smov %s3405_s0 }
  0x9f   : > { %870 = vmatpush.bf16.msra.mxu0 %v2290_v8  ;;  %1032 = vmatpush.bf16.msra.mxu2 %v2308_v45  ;;  %s2799_s11 = scalar_lea.hbm %s3406_s5, 16 }
  0xa0   : > { %952 = vmatpush.bf16.msra.mxu1 %v2298_v9 }
  0xa3   : > { %871 = vmatpush.bf16.msra.mxu0 %v2289_v10  ;;  %1033 = vmatpush.bf16.msra.mxu2 %v2307_v46 }
  0xa4   : > { %953 = vmatpush.bf16.msra.mxu1 %v2297_v11 }
  0xa7   : > { %872 = vmatpush.bf16.msra.mxu0 %v2288_v12  ;;  %1034 = vmatpush.bf16.msra.mxu2 %v2306_v48 }
  0xa8   : > { %954 = vmatpush.bf16.msra.mxu1 %v2296_v13 }
  0xab   : > { %873 = vmatpush.bf16.msra.mxu0 %v2287_v14  ;;  %1035 = vmatpush.bf16.msra.mxu2 %v2305_v49 }
  0xac   : > { %955 = vmatpush.bf16.msra.mxu1 %v2295_v15 }
  0xae   : > { %874 = vmatmul.bf16.vlgmr.msra.gmra.mxu0 %v813_v18 }
  0xaf   : > { %956 = vmatmul.bf16.vlgmr.msra.gmra.mxu1 %v895_v19  ;;  %1036 = vmatpush.bf16.msra.mxu2 %v2304_v51 }
  0xb3   : > { %1037 = vmatpush.bf16.msra.mxu2 %v2303_v53  ;;  %v2318_v53 = vld [vmem:[#allocation13 + $0x38] sm:$0xff] }
  0xb6   : > { %1038 = vmatmul.bf16.vlgmr.msra.gmra.mxu2 %v977_v55 }
  0xb7   : > { %1417 = vmatpush.bf16.msrb.mxu2 %v2318_v53 }
  0xbb   : > { %1418 = vmatpush.bf16.msrb.mxu2 %v2317_v54  ;;  %v2197_v54 = vld [vmem:[#allocation14 + $0x50] sm:$0xf] }
 0x12b   : > { %v875_v30 = vpop.f32.mrf.mxu0 }
 0x12c   : > { %v957_v31 = vpop.f32.mrf.mxu1  ;;  %v876_v33 = vadd.f32 %v2474_v26, %v875_v30 }
 0x12d   : > { %v3215_v34 = vadd.f32 %v2475_v27, %v957_v31 }
 0x12e   : > { %v1051_v35 = vmul.f32 %v1050_v28, %v876_v33  ;;  %v1278_v36 = vmul.f32 %v1277_v29, %v876_v33  ;;  %v3220_v37 = vmul.f32 %v1201_v32, %v876_v33  ;;  %v1104_v42 = vmul.f32 %v1103_v41, %v876_v33 }
 0x12f   : > { %1067 = vmatpush.xpose.msra.mxu3 %v3215_v34  ;;  %1294 = vmatpush.xpose.msrb.mxu0 %v3215_v34 }
 0x132   : > { %1068 = vmatmul.f32.vlgmr.msra.gmra.mxu3 %v1051_v35  ;;  %1295 = vmatmul.f32.vlgmr.msrb.gmra.mxu0 %v1278_v36 }
 0x133   : > { %1120 = vmatpush.xpose.msrb.mxu3 %v3215_v34  ;;  %v877_v39 = vpop.f32.mrf.mxu0 }
 0x134   : > { %v959_v40 = vpop.f32.mrf.mxu1 }
 0x139   : > { %v1039_v3 = vpop.f32.mrf.mxu2 }
 0x13a   : > { %1121 = vmatmul.f32.vlgmr.msrb.gmra.mxu3 %v1104_v42  ;;  %v1040_v6 = vadd.f32 %v2476_v5, %v1039_v3  ;;  %v2313_v3 = vld [vmem:[#allocation13 + $0x10] sm:$0xff] }
 0x13c   : > { %v1149_v7 = vmul.f32 %v2116_v38, %v1040_v6  ;;  %v1097_v8 = vmul.f32 %v3202_v24, %v1040_v6  ;;  %v1323_v9 = vmul.f32 %v3204_v25, %v1040_v6  ;;  %v1247_v10 = vmul.f32 %v3200_v23, %v1040_v6 }
 0x13e   : > { %1168 = vmatpush.msra.mxu3 %v1149_v7  ;;  %1342 = vmatpush.msrb.mxu1 %v1323_v9 }
 0x140   : > { %1191 = vmatpush.msrb.mxu3 %v1097_v8 }
 0x141   : > { %v1041_v4 = vpop.f32.mrf.mxu2 }
 0x1af   : > { %v1296_v42 = vpop.f32.mrf.mxu0 }
 0x1b0   : > { %v1299_v43 = vsel %vm1072_vm8, %v1296_v42, -inf }
 0x1b5   : > { %v1069_v47 = vpop.f32.mrf.mxu3 }
 0x1b6   : > { %v1073_v56 = vsel %vm1072_vm8, %v1069_v47, -inf }
 0x1bd   : > { %v1122_v50 = vpop.f32.mrf.mxu3 }
 0x1be   : > { %v1125_v52 = vsel %vm1072_vm8, %v1122_v50, -inf }
 0x1bf   : > { %1126 = vmax.xlane.f32.xlu0 %v1125_v52 }
 0x1c7   : > { %1074 = vmax.xlane.f32.xlu0 %v1073_v56  ;;  %v2316_v56 = vld [vmem:[#allocation13 + $0x28] sm:$0xff] }
 0x1c8   : > { %1419 = vmatpush.bf16.msrb.mxu2 %v2316_v56  ;;  %v2329_v56 = vld [vmem:[#allocation14 + $0x54] sm:$0xf] }
 0x232   : > { %v1127_v57 = vpop.xlane.xlu0 %1126 }
 0x233   : > { %v1128_v58 = vsub.f32 %v1122_v50, %v1127_v57  ;;  %v2315_v57 = vld [vmem:[#allocation13 + $0x20] sm:$0xff] }
 0x234   : > { %1420 = vmatpush.bf16.msrb.mxu2 %v2315_v57 }
 0x235   : > { %v1129_v59 = vmul.f32 1.442695, %v1128_v58 }
 0x237   : > { %2483 = vpow2.f32 %v1129_v59 }
 0x23a   : > { %v1075_v60 = vpop.xlane.xlu0 %1074 }
 0x23b   : > { %v1076_v61 = vsub.f32 %v1069_v47, %v1075_v60 }
 0x23d   : > { %v2484_v62 = vpop.eup %2483  ;;  %v1077_v63 = vmul.f32 1.442695, %v1076_v61 }
 0x23e   : > { %v1131_v0 = vsel %vm1072_vm8, %v2484_v62, 0.0 }
 0x23f   : > { %2485 = vpow2.f32 %v1077_v63  ;;  %1132 = vadd.xlane.f32.xlu1 %v1131_v0 }
 0x245   : > { %v2486_v1 = vpop.eup %2485 }
 0x246   : > { %v1079_v2 = vsel %vm1072_vm8, %v2486_v1, 0.0 }
 0x247   : > { %1080 = vadd.xlane.f32.xlu1 %v1079_v2 }
 0x2b2   : > { %v1133_v11 = vpop.xlane.xlu1 %1132 }
 0x2b3   : > { %2487 = vrcp.f32 %v1133_v11  ;;  %v1145_v17 = vand.u32 2147483648, %v1133_v11  ;;  %v1143_v19 = vand.u32 2147483647, %v1133_v11  ;;  %vm1139_vm10 = vweird.f32 %v1133_v11 }
 0x2b5   : > { %v1146_v22 = vor.u32 1.1754944e-38, %v1145_v17  ;;  %vm1144_vm12 = vcmp.eq.f32.partialorder %v1143_v19, 8.507059e+37 }
 0x2b9   : > { %v2488_v12 = vpop.eup %2487 }
 0x2ba   : > { %v1135_v13 = vmul.f32 %v2488_v12, %v1133_v11  ;;  %v1081_v14 = vpop.xlane.xlu1 %1080  ;;  %vm1140_vm9 = vweird.f32 %v2488_v12 }
 0x2bb   : > { %2489 = vrcp.f32 %v1081_v14  ;;  %vm1141_vm11 = vmor %vm1139_vm10, %vm1140_vm9  ;;  %v1093_v28 = vand.u32 2147483648, %v1081_v14  ;;  %v1091_v30 = vand.u32 2147483647, %v1081_v14  ;;  %vm1087_vm14 = vweird.f32 %v1081_v14 }
 0x2bc   : > { %v1136_v15 = vsub.f32 1.0, %v1135_v13 }
 0x2bd   : > { %v1094_v32 = vor.u32 1.1754944e-38, %v1093_v28  ;;  %vm1092_vm0 = vcmp.eq.f32.partialorder %v1091_v30, 8.507059e+37 }
 0x2be   : > { %v1137_v18 = vmul.f32 %v2488_v12, %v1136_v15 }
 0x2c0   : > { %v1138_v20 = vadd.f32 %v2488_v12, %v1137_v18 }
 0x2c1   : > { %v2490_v21 = vpop.eup %2489 }
 0x2c2   : > { %v1142_v24 = vsel %vm1141_vm11, %v2488_v12, %v1138_v20  ;;  %v1083_v23 = vmul.f32 %v2490_v21, %v1081_v14  ;;  %vm1088_vm13 = vweird.f32 %v2490_v21  ;;  %v2312_v20 = vld [vmem:[#allocation13 + $0x8] sm:$0xff] }
 0x2c3   : > { %v1147_v25 = vsel %vm1144_vm12, %v1146_v22, %v1142_v24  ;;  %vm1089_vm15 = vmor %vm1087_vm14, %vm1088_vm13 }
 0x2c4   : > { %v1084_v26 = vsub.f32 1.0, %v1083_v23  ;;  %v1148_v27 = vmul.f32 %v2484_v62, %v1147_v25  ;;  %v2314_v62 = vld [vmem:[#allocation13 + $0x18] sm:$0xff] }
 0x2c5   : > { %1421 = vmatpush.bf16.msrb.mxu2 %v2314_v62  ;;  %v2327_v62 = vld [vmem:[#allocation14 + $0x44] sm:$0xf] }
 0x2c6   : > { %v1085_v29 = vmul.f32 %v2490_v21, %v1084_v26  ;;  %2117 = vmatmul.msk.f32.vlgmr.msra.gmra.mxu3 %vm1072_vm8, %v1148_v27  ;;  %v2477_v27 = vld [vmem:[%s3329_s10] ss:$0 sm:$0xff] }
 0x2c7   : > { %1218 = vmatpush.xpose.msra.mxu3 %v3215_v34 }
 0x2c8   : > { %v1086_v31 = vadd.f32 %v2490_v21, %v1085_v29 }
 0x2c9   : > { %1422 = vmatpush.bf16.msrb.mxu2 %v2313_v3  ;;  %v2326_v3 = vld [vmem:[#allocation14 + $0x34] sm:$0xf0] }
 0x2ca   : > { %v1090_v33 = vsel %vm1089_vm15, %v2490_v21, %v1086_v31  ;;  %v2311_v21 = vld [vmem:[#allocation13] sm:$0xff] }
 0x2cb   : > { %v1095_v35 = vsel %vm1092_vm0, %v1094_v32, %v1090_v33  ;;  %v2874_v32 = vmov 128.0   ;;  %v2213_v33 = vld [vmem:[#allocation14 + $0x70] sm:$0xf] }
 0x2cc   : > { %v1096_v36 = vmul.f32 %v2486_v1, %v1095_v35  ;;  %v2334_v35 = vld [vmem:[#allocation14 + $0x74] sm:$0xf0] }
 0x2cd   : > { %1423 = vmatpush.bf16.msrb.mxu2 %v2312_v20  ;;  %v2157_v20 = vld [vmem:[#allocation14] sm:$0xf] }
 0x2ce   : > { %2118 = vmatmul.msk.f32.vlgmr.msrb.gmra.mxu3 %vm1072_vm8, %v1096_v36  ;;  %v2333_v36 = vld [vmem:[#allocation14 + $0x74] sm:$0xf] }
 0x2cf   : > { %1266 = vmatpush.msrb.mxu3 %v1247_v10 }
 0x2d1   : > { %1424 = vmatpush.bf16.msrb.mxu2 %v2311_v21  ;;  %v2320_v21 = vld [vmem:[#allocation14 + $0x4] sm:$0xf0] }
 0x2d6   : > { %1219 = vmatmul.f32.vlgmr.msra.gmra.mxu3 %v3220_v37 }
 0x349   : > { %v1170_v38 = vpop.f32.mrf.mxu3 }
 0x351   : > { %v1193_v39 = vpop.f32.mrf.mxu3 }
 0x352   : > { %v3238_v40 = vadd.f32 %v1193_v39, %v1170_v38  ;;  %v2214_v38 = vor.u32 %v2334_v35, %v2213_v33  ;;  %v2215_v39 = vld [vmem:[#allocation14 + $0x78] sm:$0xf0] }
 0x354   : > { %1571 = vmatpush.bf16.msra.mxu3 %v2214_v38 }
 0x359   : > { %v1220_v41 = vpop.f32.mrf.mxu3 }
 0x35a   : > { %v1223_v34 = vsel %vm1072_vm8, %v1220_v41, -inf }
 0x35b   : > { %1224 = vmax.xlane.f32.xlu2 %v1223_v34 }
 0x363   : > { %1300 = vmax.xlane.f32.xlu2 %v1299_v43 }
 0x3ce   : > { %v1225_v44 = vpop.xlane.xlu2 %1224 }
 0x3cf   : > { %v1226_v45 = vsub.f32 %v1220_v41, %v1225_v44 }
 0x3d1   : > { %v1227_v46 = vmul.f32 1.442695, %v1226_v45 }
 0x3d3   : > { %2491 = vpow2.f32 %v1227_v46 }
 0x3d6   : > { %v1301_v47 = vpop.xlane.xlu2 %1300 }
 0x3d7   : > { %v1302_v48 = vsub.f32 %v1296_v42, %v1301_v47 }
 0x3d9   : > { %v2492_v49 = vpop.eup %2491  ;;  %v1303_v37 = vmul.f32 1.442695, %v1302_v48 }
 0x3da   : > { %v1229_v50 = vsel %vm1072_vm8, %v2492_v49, 0.0 }
 0x3db   : > { %2493 = vpow2.f32 %v1303_v37  ;;  %1230 = vadd.xlane.f32.xlu0 %v1229_v50  ;;  %v2332_v37 = vld [vmem:[#allocation14 + $0x64] sm:$0xf0]  ;;  %v2331_v50 = vld [vmem:[#allocation14 + $0x64] sm:$0xf] }
 0x3e1   : > { %v2494_v51 = vpop.eup %2493 }
 0x3e2   : > { %v1305_v52 = vsel %vm1072_vm8, %v2494_v51, 0.0 }
 0x3e3   : > { %1306 = vadd.xlane.f32.xlu1 %v1305_v52  ;;  %v2207_v52 = vld [vmem:[#allocation14 + $0x68] sm:$0xf0] }
 0x3e4   : > { %v2210_v53 = vor.u32 %v2331_v50, %v2207_v52  ;;  %v2346_v50 = vld [vmem:[#allocation16 + $0x58] sm:$0xff]  ;;  %v2345_v52 = vld [vmem:[#allocation16 + $0x50] sm:$0xff] }
 0x44e   : > { %v1231_v55 = vpop.xlane.xlu0 %1230 }
 0x44f   : > { %2495 = vrcp.f32 %v1231_v55  ;;  %v1243_v63 = vand.u32 2147483648, %v1231_v55  ;;  %v1241_v1 = vand.u32 2147483647, %v1231_v55  ;;  %vm1237_vm2 = vweird.f32 %v1231_v55 }
 0x451   : > { %v1244_v5 = vor.u32 1.1754944e-38, %v1243_v63  ;;  %vm1242_vm4 = vcmp.eq.f32.partialorder %v1241_v1, 8.507059e+37 }
 0x455   : > { %v2496_v58 = vpop.eup %2495 }
 0x456   : > { %v1233_v59 = vmul.f32 %v2496_v58, %v1231_v55  ;;  %v1307_v60 = vpop.xlane.xlu1 %1306  ;;  %vm1238_vm1 = vweird.f32 %v2496_v58  ;;  %v2330_v55 = vld [vmem:[#allocation14 + $0x54] sm:$0xf0] }
 0x457   : > { %2497 = vrcp.f32 %v1307_v60  ;;  %vm1239_vm3 = vmor %vm1237_vm2, %vm1238_vm1  ;;  %v1319_v11 = vand.u32 2147483648, %v1307_v60  ;;  %v1317_v13 = vand.u32 2147483647, %v1307_v60  ;;  %vm1313_vm6 = vweird.f32 %v1307_v60 }
 0x458   : > { %v1234_v61 = vsub.f32 1.0, %v1233_v59  ;;  %2499 = vrcp.f32 %v2874_v32  ;;  %v2198_v57 = vor.u32 %v2330_v55, %v2197_v54  ;;  %v2344_v54 = vld [vmem:[#allocation16 + $0x48] sm:$0xff]  ;;  %v2337_v55 = vld [vmem:[#allocation16 + $0x10] sm:$0xff] }
 0x459   : > { %v1320_v15 = vor.u32 1.1754944e-38, %v1319_v11  ;;  %vm1318_vm9 = vcmp.eq.f32.partialorder %v1317_v13, 8.507059e+37 }
 0x45a   : > { %v1235_v0 = vmul.f32 %v2496_v58, %v1234_v61  ;;  %v2328_v61 = vld [vmem:[#allocation14 + $0x44] sm:$0xf0] }
 0x45c   : > { %v1236_v2 = vadd.f32 %v2496_v58, %v1235_v0  ;;  %v2191_v0 = vld [vmem:[#allocation14 + $0x48] sm:$0xf0] }
 0x45d   : > { %v2498_v4 = vpop.eup %2497  ;;  %v2194_v1 = vor.u32 %v2327_v62, %v2191_v0 }
 0x45e   : > { %v1240_v6 = vsel %vm1239_vm3, %v2496_v58, %v1236_v2  ;;  %v1309_v7 = vmul.f32 %v2498_v4, %v1307_v60  ;;  %vm1314_vm5 = vweird.f32 %v2498_v4  ;;  %v2500_v41 = vpop.eup %2499  ;;  %v2199_v58 = vld [vmem:[#allocation14 + $0x58] sm:$0xf0]  ;;  %v2189_v60 = vld [vmem:[#allocation14 + $0x40] sm:$0xf]  ;;  %v2181_v2 = vld [vmem:[#allocation14 + $0x30] sm:$0xf] }
 0x45f   : > { %v1245_v8 = vsel %vm1242_vm4, %v1244_v5, %v1240_v6  ;;  %vm1315_vm7 = vmor %vm1313_vm6, %vm1314_vm5  ;;  %v1436_v34 = vmul.f32 128.0, %v2500_v41  ;;  %v2202_v59 = vor.u32 %v2329_v56, %v2199_v58  ;;  %v2190_v63 = vor.u32 %v2328_v61, %v2189_v60  ;;  %v2183_v6 = vld [vmem:[#allocation14 + $0x38] sm:$0xf0]  ;;  %v2343_v56 = vld [vmem:[#allocation16 + $0x40] sm:$0xff] }
 0x460   : > { %v1310_v9 = vsub.f32 1.0, %v1309_v7  ;;  %v1246_v10 = vmul.f32 %v2492_v49, %v1245_v8  ;;  %v2205_v49 = vld [vmem:[#allocation14 + $0x60] sm:$0xf]  ;;  %v2182_v5 = vor.u32 %v2326_v3, %v2181_v2  ;;  %v1485_v58 = vld [vmem:[%s3402_s22] sm:$0x3] }
 0x461   : > { %v1437_v42 = vsub.f32 1.0, %v1436_v34  ;;  %v2173_v8 = vld [vmem:[#allocation14 + $0x20] sm:$0xf]  ;;  %v1488_v60 = vperm.slane %v1485_v58, 1  ;;  %v1487_v0 = vperm.slane %v1485_v58, 0 }
 0x462   : > { %v1311_v12 = vmul.f32 %v2498_v4, %v1310_v9  ;;  %2120 = vmatmul.msk.f32.vlgmr.msrb.gmra.mxu3 %vm1072_vm8, %v1246_v10  ;;  %v2324_v9 = vld [vmem:[#allocation14 + $0x24] sm:$0xf0]  ;;  %v2323_v10 = vld [vmem:[#allocation14 + $0x24] sm:$0xf] }
 0x463   : > { %v1438_v43 = vmul.f32 %v2500_v41, %v1437_v42  ;;  %v2174_v11 = vor.u32 %v2324_v9, %v2173_v8  ;;  %v2479_v42 = vld [vmem:[%s3401_s9] ss:$0 sm:$0xff] }
 0x464   : > { %v1312_v14 = vadd.f32 %v2498_v4, %v1311_v12  ;;  %v2175_v12 = vld [vmem:[#allocation14 + $0x28] sm:$0xf0] }
 0x465   : > { %v1439_v44 = vadd.f32 %v2500_v41, %v1438_v43  ;;  %v2178_v13 = vor.u32 %v2323_v10, %v2175_v12 }
 0x466   : > { %v1316_v17 = vsel %vm1315_vm7, %v2498_v4, %v1312_v14  ;;  %v2325_v4 = vld [vmem:[#allocation14 + $0x34] sm:$0xf]  ;;  %v2165_v14 = vld [vmem:[#allocation14 + $0x10] sm:$0xf] }
 0x467   : > { %v1321_v18 = vsel %vm1318_vm9, %v1320_v15, %v1316_v17  ;;  %v2186_v7 = vor.u32 %v2325_v4, %v2183_v6  ;;  %v2322_v15 = vld [vmem:[#allocation14 + $0x14] sm:$0xf0]  ;;  %v2321_v17 = vld [vmem:[#allocation14 + $0x14] sm:$0xf] }
 0x468   : > { %v1322_v19 = vmul.f32 %v2494_v51, %v1321_v18  ;;  %v2206_v51 = vor.u32 %v2332_v37, %v2205_v49  ;;  %v2166_v18 = vor.u32 %v2322_v15, %v2165_v14  ;;  %v2341_v49 = vld [vmem:[#allocation16 + $0x30] sm:$0xff]  ;;  %v2347_v37 = vld [vmem:[#allocation16 + $0x60] sm:$0xff] }
 0x46a   : > { %2122 = vmatmul.msk.f32.vlgmr.msrb.gmra.mxu1 %vm1072_vm8, %v1322_v19  ;;  %vm1440_vm8 = vweird.f32 %v2500_v41  ;;  %1572 = vmatpush.bf16.msra.mxu3 %v2206_v51  ;;  %v2167_v19 = vld [vmem:[#allocation14 + $0x18] sm:$0xf0]  ;;  %v2339_v51 = vld [vmem:[#allocation16 + $0x20] sm:$0xff] }
 0x46b   : > { %v3251_v45 = vsel %vm1440_vm8, %v2500_v41, %v1439_v44 }
 0x46e   : > { %1573 = vmatpush.bf16.msra.mxu3 %v2198_v57  ;;  %v2336_v57 = vld [vmem:[#allocation16 + $0x8] sm:$0xff] }
 0x472   : > { %1574 = vmatpush.bf16.msra.mxu3 %v2190_v63 }
 0x476   : > { %1575 = vmatpush.bf16.msra.mxu3 %v2182_v5 }
 0x47a   : > { %1576 = vmatpush.bf16.msra.mxu3 %v2174_v11 }
 0x47e   : > { %1577 = vmatpush.bf16.msra.mxu3 %v2166_v18 }
 0x4e5   : > { %v1268_v22 = vpop.f32.mrf.mxu3 }
 0x4e6   : > { %v1271_v24 = vadd.f32 %v1268_v22, %v3238_v40  ;;  %v2218_v40 = vor.u32 %v2333_v36, %v2215_v39  ;;  %v2170_v22 = vor.u32 %v2321_v17, %v2167_v19 }
 0x4e7   : > { %v1344_v23 = vpop.f32.mrf.mxu1 }
 0x4e8   : > { %v1347_v25 = vadd.f32 %v1344_v23, %v1271_v24  ;;  %1584 = vmatpush.bf16.msra.mxu0 %v2218_v40  ;;  %v2319_v24 = vld [vmem:[#allocation14 + $0x4] sm:$0xf]  ;;  %v2159_v23 = vld [vmem:[#allocation14 + $0x8] sm:$0xf0]  ;;  %v2478_v40 = vld [vmem:[%s3400_s17] ss:$0 sm:$0xff]  ;;  %s1818_s17 = scalar_lea.hbm %s3405_s0, %s2284_s19 }
 0x4e9   : > { %s1822_s22 = sshll.u32 %s1818_s17, 4  ;;  %s1823_s22 = int_to_ptr.hbm [resolvable:$true] %s1822_s22 }
 0x4ea   : > { %v1364_v26 = vpack.c.bf16 %v1347_v25, %v1347_v25  ;;  %v2158_v25 = vor.u32 %v2320_v21, %v2157_v20  ;;  %s2793_s7 = sshra.s32 %s1823_s22, 4  ;;  %s2794_s7 = int_to_ptr.hbm [resolvable:$true] %s2793_s7 }
 0x4eb   : > { %p2800_p6 = scmp.lt.s32.totalorder %s2794_s7, %s3406_s5 }
 0x4ec   : > { %1425 = vmatmul.bf16.vlgmr.msrb.gmra.mxu2 %v1364_v26  ;;  %1585 = vmatpush.bf16.msra.mxu0 %v2210_v53  ;;  %v2162_v26 = vor.u32 %v2319_v24, %v2159_v23  ;;  %v2338_v53 = vld [vmem:[#allocation16 + $0x18] sm:$0xff] }
 0x4ed   : > { %1578 = vmatpush.bf16.msra.mxu3 %v2158_v25  ;;  %v2480_v25 = vld [vmem:[%s3403_s26] ss:$0 sm:$0xff]  ;;  %s2795_s26 = scalar_lea.hbm %s2794_s7, 8 }
 0x4ee   : > { %p2796_p13 = scmp.ne.s32.totalorder %s2794_s7, %s2795_s26  ;;  %p2801_p11 = scmp.lt.s32.totalorder %s2799_s11, %s2795_s26 }
 0x4f0   : > { %1586 = vmatpush.bf16.msra.mxu0 %v2202_v59  ;;  %v2335_v59 = vld [vmem:[#allocation16] sm:$0xff]  ;;  %p2797_p7 = pnand %p2796_p13, %p3057_p0  ;;  %p2802_p12 = por %p2801_p11, %p2800_p6 }
 0x4f2   : > { %p2798_p10 = pneg %p2797_p7 }
 0x4f4   : > { %1587 = vmatpush.bf16.msra.mxu0 %v2194_v1  ;;  %p2803_p3 = pnand %p2802_p12, %p2798_p10 }
 0x4f8   : > { %1588 = vmatpush.bf16.msra.mxu0 %v2186_v7 }
 0x4fc   : > { %1589 = vmatpush.bf16.msra.mxu0 %v2178_v13 }
 0x500   : > { %1590 = vmatpush.bf16.msra.mxu0 %v2170_v22 }
 0x504   : > { %1591 = vmatpush.bf16.msra.mxu0 %v2162_v26 }
 0x56f   : > { %v1426_v28 = vpop.f32.mrf.mxu2 }
 0x570   : > { %v1427_v29 = vadd.f32 %v2477_v27, %v1426_v28  ;;  %v2350_v27 = vld [vmem:[#allocation16 + $0x78] sm:$0xff] }
 0x571   : > { %1762 = vmatpush.bf16.msra.mxu2 %v2350_v27 }
 0x572   : > { %v1430_v30 = vadd.f32 %v1427_v29, %v3194_v16 }
 0x574   : > { %1433 = vadd.xlane.f32.xlu2 %v1430_v30 }
 0x577   : > { %v1428_v31 = vpop.f32.mrf.mxu2 }
 0x5e7   : > { %v1434_v16 = vpop.xlane.xlu2 %1433 }
 0x5e8   : > { %v1442_v46 = vmul.f32 %v3251_v45, %v1434_v16 }
 0x5ea   : > { %v3254_v47 = vsub.f32 %v1430_v30, %v1442_v46  ;;  %v2349_v30 = vld [vmem:[#allocation16 + $0x70] sm:$0xff]  ;;  %v2342_v46 = vld [vmem:[#allocation16 + $0x38] sm:$0xff] }
 0x5eb   : > { %1763 = vmatpush.bf16.msra.mxu2 %v2349_v30  ;;  %1749 = vmatpush.bf16.msra.mxu1 %v2342_v46 }
 0x5ec   : > { %v1444_v48 = vmul.f32 %v3254_v47, %v3254_v47 }
 0x5ee   : > { %1445 = vadd.xlane.f32.xlu0 %v1444_v48  ;;  %v2348_v48 = vld [vmem:[#allocation16 + $0x68] sm:$0xff] }
 0x5ef   : > { %1764 = vmatpush.bf16.msra.mxu2 %v2348_v48  ;;  %1750 = vmatpush.bf16.msra.mxu1 %v2341_v49  ;;  %v2481_v48 = vld [vmem:[%s3404_s23] ss:$0 sm:$0xff] }
 0x5f3   : > { %1765 = vmatpush.bf16.msra.mxu2 %v2347_v37  ;;  %v2482_v37 = vld [vmem:[%s3408_s14] ss:$0 sm:$0xff] }
 0x5f7   : > { %1766 = vmatpush.bf16.msra.mxu2 %v2346_v50 }
 0x5fb   : > { %1767 = vmatpush.bf16.msra.mxu2 %v2345_v52 }
 0x5ff   : > { %1768 = vmatpush.bf16.msra.mxu2 %v2344_v54 }
 0x603   : > { %1769 = vmatpush.bf16.msra.mxu2 %v2343_v56 }
 0x661   : > { %v1446_v28 = vpop.xlane.xlu0 %1445 }
 0x662   : > { %v1447_v29 = vmul.f32 %v1446_v28, %v3251_v45 }
 0x664   : > { %v1448_v31 = vadd.f32 1e-12, %v1447_v29 }
 0x666   : > { %2501 = vrsqrt.f32 %v1448_v31  ;;  %vm1455_vm11 = vweird.f32 %v1448_v31 }
 0x66c   : > { %v2502_v32 = vpop.eup %2501 }
 0x66d   : > { %v1450_v33 = vmul.f32 %v2502_v32, %v1448_v31  ;;  %vm1456_vm10 = vweird.f32 %v2502_v32 }
 0x66e   : > { %vm1457_vm12 = vmor %vm1455_vm11, %vm1456_vm10 }
 0x66f   : > { %v1451_v35 = vmul.f32 %v2502_v32, %v1450_v33 }
 0x671   : > { %v1452_v36 = vmul.f32 0.5, %v1451_v35 }
 0x673   : > { %v1453_v38 = vsub.f32 1.5, %v1452_v36 }
 0x675   : > { %v1454_v39 = vmul.f32 %v2502_v32, %v1453_v38 }
 0x677   : > { %v1458_v41 = vsel %vm1457_vm12, %v2502_v32, %v1454_v39 }
 0x678   : > { %v1459_v34 = vmul.f32 %v1458_v41, %v3254_v47  ;;  %v2340_v47 = vld [vmem:[#allocation16 + $0x28] sm:$0xff] }
 0x679   : > { %1751 = vmatpush.bf16.msra.mxu1 %v2340_v47 }
 0x67a   : > { %v1463_v43 = vmul.f32 %v2478_v40, %v1459_v34 }
 0x67c   : > { %v3266_v44 = vadd.f32 %v2479_v42, %v1463_v43 }
 0x67d   : > { %1752 = vmatpush.bf16.msra.mxu1 %v2339_v51 }
 0x67e   : > { %v1484_v16 = vpack.c.bf16 %v3266_v44, %v3266_v44 }
 0x680   : > { %1579 = vmatmul.bf16.vlgmr.msra.gmra.mxu3 %v1484_v16  ;;  %1592 = vmatmul.bf16.vlgmr.msra.gmra.mxu0 %v1484_v16 }
 0x681   : > { %1753 = vmatpush.bf16.msra.mxu1 %v2338_v53 }
 0x685   : > { %1754 = vmatpush.bf16.msra.mxu1 %v2337_v55 }
 0x689   : > { %1755 = vmatpush.bf16.msra.mxu1 %v2336_v57 }
 0x68d   : > { %1756 = vmatpush.bf16.msra.mxu1 %v2335_v59 }
 0x6fd   : > { %v1593_v61 = vpop.f32.mrf.mxu0 }
 0x6fe   : > { %v1594_v62 = vadd.f32 %v1593_v61, %v1488_v60 }
 0x700   : > { %v1600_v63 = vmul.f32 0.044715, %v1594_v62  ;;  %v1598_v15 = vmul.f32 0.5, %v1594_v62 }
 0x702   : > { %v1602_v1 = vmul.f32 %v1600_v63, %v1594_v62 }
 0x703   : > { %v1580_v2 = vpop.f32.mrf.mxu3 }
 0x704   : > { %v1604_v3 = vmul.f32 %v1602_v1, %v1594_v62  ;;  %v1581_v4 = vadd.f32 %v1580_v2, %v1487_v0 }
 0x705   : > { %v1595_v5 = vpop.f32.mrf.mxu0 }
 0x706   : > { %v1599_v6 = vmul.f32 0.044715, %v1581_v4  ;;  %v1606_v7 = vadd.f32 %v1604_v3, %v1594_v62  ;;  %v1597_v21 = vmul.f32 0.5, %v1581_v4 }
 0x708   : > { %v1601_v8 = vmul.f32 %v1599_v6, %v1581_v4  ;;  %v1608_v9 = vmul.f32 0.7978846, %v1606_v7 }
 0x70a   : > { %v1603_v10 = vmul.f32 %v1601_v8, %v1581_v4  ;;  %2503 = vtanh.f32 %v1608_v9 }
 0x70b   : > { %v1582_v11 = vpop.f32.mrf.mxu3 }
 0x70c   : > { %v1605_v12 = vadd.f32 %v1603_v10, %v1581_v4 }
 0x70e   : > { %v1607_v13 = vmul.f32 0.7978846, %v1605_v12 }
 0x710   : > { %v2504_v14 = vpop.eup %2503  ;;  %2505 = vtanh.f32 %v1607_v13 }
 0x711   : > { %v1612_v17 = vadd.f32 1.0, %v2504_v14 }
 0x713   : > { %v1614_v18 = vmul.f32 %v1612_v17, %v1598_v15 }
 0x715   : > { %v1648_v19 = vpack.c.bf16 %v1614_v18, %v1614_v18 }
 0x716   : > { %v2506_v20 = vpop.eup %2505 }
 0x717   : > { %1770 = vmatmul.bf16.vlgmr.msra.gmra.mxu2 %v1648_v19  ;;  %v1611_v22 = vadd.f32 1.0, %v2506_v20 }
 0x719   : > { %v1613_v24 = vmul.f32 %v1611_v22, %v1597_v21 }
 0x71b   : > { %v1647_v23 = vpack.c.bf16 %v1613_v24, %v1613_v24 }
 0x71d   : > { %1757 = vmatmul.bf16.vlgmr.msra.gmra.mxu1 %v1647_v23 }
 0x79a   : > { %v1758_v26 = vpop.f32.mrf.mxu1  ;;  %v1771_v27 = vpop.f32.mrf.mxu2 }
 0x79b   : > { %v1759_v28 = vadd.f32 %v2480_v25, %v1758_v26 }
 0x79d   : > { %v1772_v29 = vadd.f32 %v1771_v27, %v1759_v28 }
 0x79f   : > { %v1775_v30 = vadd.f32 %v1772_v29, %v3266_v44 }
 0x7a1   : > { %1778 = vadd.xlane.f32.xlu1 %v1775_v30 }
 0x7a2   : > { %v1760_v31 = vpop.f32.mrf.mxu1  ;;  %v1773_v32 = vpop.f32.mrf.mxu2 }
 0x814   : > { %v1779_v33 = vpop.xlane.xlu1 %1778 }
 0x815   : > { %v1780_v35 = vmul.f32 %v1779_v33, %v3251_v45 }
 0x817   : > { %v1781_v36 = vsub.f32 %v1775_v30, %v1780_v35 }
 0x819   : > { %v1782_v38 = vmul.f32 %v1781_v36, %v1781_v36 }
 0x81b   : > { %1783 = vadd.xlane.f32.xlu2 %v1782_v38 }
 0x88e   : > { %v1784_v39 = vpop.xlane.xlu2 %1783 }
 0x88f   : > { %v1785_v40 = vmul.f32 %v1784_v39, %v3251_v45 }
 0x891   : > { %v1786_v41 = vadd.f32 1e-12, %v1785_v40 }
 0x893   : > { %2507 = vrsqrt.f32 %v1786_v41  ;;  %vm1793_vm14 = vweird.f32 %v1786_v41 }
 0x899   : > { %v2508_v34 = vpop.eup %2507 }
 0x89a   : > { %v1788_v42 = vmul.f32 %v2508_v34, %v1786_v41  ;;  %vm1794_vm13 = vweird.f32 %v2508_v34 }
 0x89b   : > { %vm1795_vm15 = vmor %vm1793_vm14, %vm1794_vm13 }
 0x89c   : > { %v1789_v43 = vmul.f32 %v2508_v34, %v1788_v42 }
 0x89e   : > { %v1790_v44 = vmul.f32 0.5, %v1789_v43 }
 0x8a0   : > { %v1791_v16 = vsub.f32 1.5, %v1790_v44 }
 0x8a2   : > { %v1792_v46 = vmul.f32 %v2508_v34, %v1791_v16 }
 0x8a4   : > { %v1796_v45 = vsel %vm1795_vm15, %v2508_v34, %v1792_v46 }
 0x8a5   : > { %v1797_v49 = vmul.f32 %v1796_v45, %v1781_v36 }
 0x8a7   : > { %v1801_v47 = vmul.f32 %v2481_v48, %v1797_v49 }
 0x8a9   : > { %v1805_v50 = vadd.f32 %v2482_v37, %v1801_v47 }
 0x8ab   : > { %1806 = vst [vmem:[%s793_s24] sm:$0xff] %v1805_v50 }
 0x8ac   : > { %2806 = shalt.err (!%p2803_p3)
}
 0x8ad   : > { %2381 = dma.vmem_to_hbm [thread:$0]  (%p3057_p0), %s1821_s25, 128, %s1823_s22, %s1808_s16  }
 0x8ae PF: > { %s3409_s13 = sld [smem:[#allocation24_spill]] }
 0x8af   : > { %s3411_s21 = sld [smem:[#allocation25_spill]] }
 0x8b4   : > { %s1834_s0 = sand.u32 1, %s3409_s13  }
 0x8b5   : > { %p3412_p8 = scmp.ge.s32.totalorder %s3411_s21, 2  ;;  %s1835_s17 = scalar_lea.sflag [#allocation4], %s1834_s0 }
 0x8b7   : > { %p2413_p9 = pnand %p3412_p8, %p3063_p5 }
 0x8b9   : > { %p2414_p2 = pneg %p2413_p9 }
 0x8bb   : > { %2844 = dma.done.wait (%p2414_p2), %s1835_s17, 128  }
 0x8bc   : > { %2846 = vsyncadd (%p2414_p2), %s1835_s17, 4294967168  ;;  %s3413_s21 = sld [smem:[#allocation26_spill]]  ;;  %s3415_s0 = smov %s2853_s30 }
 0x8bd   : > { %s3414_s2 = sld [smem:[#allocation27_spill]]  ;;  %s3416_s30 = smov %s2857_s20 }
 0x8c2   : > { %p38_p4 = scmp.ge.s32.totalorder %s3413_s21, 4  }
 0x8c3   : > { %s3417_s20 = smov %s3414_s2 }
 0x8c4   :  { %40 = sbr.rel (!%p38_p4) target bundleno = 26 (0x1a), region = 189 }
 0x8c9   :  { %1841 = vsyncpa [#allocation3], 1 }
 0x8ca   :  { %1843 = vsyncpa [#allocation3 + $0x1], 1 }
 0x8cb   :  { %1844 = vsyncpa [#allocation6], 1 }
 0x8cc   :  { %1846 = vsyncpa [#allocation6 + $0x1], 1 }
 0x8cd   :  { %1847 = vsyncpa [#allocation9], 1 }
 0x8ce   :  { %1848 = vsyncpa [#allocation12], 1 }
 0x8cf   :  { %1849 = vsyncpa [#allocation15], 1 }
 0x8d0   :  { %1850 = vsyncpa [#allocation4], 1 }
 0x8d1   :  { %1852 = vsyncpa [#allocation4 + $0x1], 1 }

</bundles_post_ra>
